<compile_context>
chip_gen: v7x
topology: tpu7x:2x2x1
jax: 0.10.0
libtpu: 0.0.40
codegen_flags: <defaults>
</compile_context>

<pallas_src>
import jax
import jax.numpy as jnp
from jax.experimental import pallas as pl
from jax.experimental.pallas import tpu as pltpu

BN_EPS = 1e-5


# ---------------------------------------------------------------------------
# Fused kernel (per (batch-group, hw-tile) grid step):
#   im2col-conv(+shift+SiLU) -> 1x1 conv(+shift+SiLU) -> pool-accumulate
#   -> [last hw step] folded Linear+BatchNorm1d head -> store
# ---------------------------------------------------------------------------
def _encoder_kernel(patches_ref, w_stem_ref, bn1_shift_ref,
                    w_pw_ref, bn2_shift_ref,
                    w_head_ref, head_shift_ref, o_ref, acc_ref):
    k = pl.program_id(1)

    @pl.when(k == 0)
    def _():
        acc_ref[...] = jnp.zeros_like(acc_ref)

    TB, HWt, Kp = patches_ref.shape
    # flatten (TB, HW_tile, Kp) -> (TB*HW_tile, Kp): free sublane split (HWt % 8 == 0)
    p = patches_ref[...].reshape(TB * HWt, Kp)                         # bf16

    # 3x3 conv as ONE im2col matmul on the MXU (BN scale pre-folded into columns).
    h = jnp.dot(p, w_stem_ref[...], preferred_element_type=jnp.float32)
    h = h + bn1_shift_ref[...]
    h = h * jax.nn.sigmoid(h)                       # SiLU (sigmoid rides the EUP slot)

    # 1x1 conv to num_features (BN scale pre-folded) + shift + SiLU.
    z = jnp.dot(h.astype(jnp.bfloat16), w_pw_ref[...],
                preferred_element_type=jnp.float32)                    # (TB*HWt, F)
    z = z + bn2_shift_ref[...]
    z = z * jax.nn.sigmoid(z)

    # pool accumulation (sum only; the 1/HW factor is folded into the head weight)
    F = z.shape[-1]
    acc_ref[...] += jnp.sum(z.reshape(TB, HWt, F), axis=1)             # (TB, F) f32

    @pl.when(k == pl.num_programs(1) - 1)
    def _():
        feats = acc_ref[...]                                           # (TB, F)
        out = jnp.dot(feats, w_head_ref[...],
                      preferred_element_type=jnp.float32) + head_shift_ref[...]
        o_ref[0] = out                                                 # (TB, Lp) dense store


def encoder_call(patches, w_stem, bn1_shift, w_pw, bn2_shift,
                 w_head, head_shift, *, batch_tile, hw_tile):
    B_pad, HW, Kp = patches.shape
    assert B_pad % batch_tile == 0 and HW % hw_tile == 0
    NB = B_pad // batch_tile
    NK = HW // hw_tile
    F = w_pw.shape[1]
    Lp = w_head.shape[1]

    def rep2(a):  # replicated 2-D weight, constant block across the whole grid
        return pl.BlockSpec(a.shape, lambda b, k: (0, 0))

    # NOTE: for real efficientnet_b3a resolutions raise vmem_limit_bytes (scoped
    # defaults: 16 MiB v5e / 32 MiB v6e,v7x) and pick hw_tile per-chip (~4-8K rows
    # on v7x, 16-32K on v6e/v5e).  At these toy shapes the defaults are ample.
    return pl.pallas_call(
        _encoder_kernel,
        out_shape=jax.ShapeDtypeStruct((NB, batch_tile, Lp), jnp.float32),
        grid=(NB, NK),
        in_specs=[
            pl.BlockSpec((batch_tile, hw_tile, Kp), lambda b, k: (b, k, 0)),
            rep2(w_stem), rep2(bn1_shift),
            rep2(w_pw), rep2(bn2_shift),
            rep2(w_head), rep2(head_shift),
        ],
        out_specs=pl.BlockSpec((1, batch_tile, Lp), lambda b, k: (b, 0, 0)),
        scratch_shapes=[pltpu.VMEM((batch_tile, F), jnp.float32)],
        compiler_params=pltpu.CompilerParams(
            dimension_semantics=("parallel", "arbitrary")),
    )(patches, w_stem, bn1_shift, w_pw, bn2_shift, w_head, head_shift)


# ---------------------------------------------------------------------------
# wrapper-side layout plumbing (NCHW -> im2col rows, padding)
# ---------------------------------------------------------------------------
def _im2col_3x3(x_nchw):
    """NCHW image -> (B, H*W, 9*Cin) im2col matrix for a padded 3x3 stride-1 conv."""
    x = jnp.transpose(x_nchw, (0, 2, 3, 1)).astype(jnp.float32)       # NHWC
    B, H, W, C = x.shape
    xp = jnp.pad(x, ((0, 0), (1, 1), (1, 1), (0, 0)))
    taps = [xp[:, kh:kh + H, kw:kw + W, :] for kh in range(3) for kw in range(3)]
    return jnp.concatenate(taps, axis=-1).reshape(B, H * W, 9 * C)


def _pick_hw_tile(hw, cap=8192):
    if hw <= cap:
        return hw
    for t in range(cap, 7, -1):
        if hw % t == 0 and t % 8 == 0:
            return t
    return hw


class PallasEncoder:
    def __init__(self, latent_dim, *, in_ch=3, stem_ch=32, num_features=128,
                 key=jax.random.PRNGKey(0)):
        ks = jax.random.split(key, 14)
        self.latent_dim = latent_dim
        K = 9 * in_ch
        self.k_pad = ((K + 7) // 8) * 8                      # 27 -> 32
        self.l_pad = ((latent_dim + 127) // 128) * 128       # 32 -> 128 (lane-dense out)

        # ----- stand-in backbone params: BN scales folded INTO the matmul weights ---
        w_stem = jax.random.normal(ks[0], (3, 3, in_ch, stem_ch), jnp.float32) * 0.1
        g1 = 1.0 + 0.1 * jax.random.normal(ks[1], (stem_ch,), jnp.float32)
        b1 = 0.1 * jax.random.normal(ks[2], (stem_ch,), jnp.float32)
        m1 = 0.05 * jax.random.normal(ks[3], (stem_ch,), jnp.float32)
        v1 = 1.0 + 0.1 * jnp.abs(jax.random.normal(ks[4], (stem_ch,), jnp.float32))
        s1 = g1 / jnp.sqrt(v1 + BN_EPS)
        w_stem_flat = w_stem.reshape(K, stem_ch) * s1[None, :]
        self.w_stem_folded = jnp.pad(
            w_stem_flat, ((0, self.k_pad - K), (0, 0))).astype(jnp.bfloat16)
        self.bn1_shift = (b1 - m1 * s1).reshape(1, stem_ch)

        w_pw = jax.random.normal(ks[5], (stem_ch, num_features), jnp.float32) * 0.05
        g2 = 1.0 + 0.1 * jax.random.normal(ks[6], (num_features,), jnp.float32)
        b2 = 0.1 * jax.random.normal(ks[7], (num_features,), jnp.float32)
        m2 = 0.05 * jax.random.normal(ks[8], (num_features,), jnp.float32)
        v2 = 1.0 + 0.1 * jnp.abs(jax.random.normal(ks[9], (num_features,), jnp.float32))
        s2 = g2 / jnp.sqrt(v2 + BN_EPS)
        self.w_pw_folded = (w_pw * s2[None, :]).astype(jnp.bfloat16)
        self.bn2_shift = (b2 - m2 * s2).reshape(1, num_features)

        # ----- `self.final`: Linear(num_features, latent) + BatchNorm1d(latent),
        # folded into one weight + one shift, padded to l_pad lanes (1/HW is folded
        # into the weight at call time since HW depends on the input resolution). ----
        w_head = jax.random.normal(ks[10], (num_features, latent_dim), jnp.float32) * 0.05
        b_head = 0.01 * jax.random.normal(ks[11], (latent_dim,), jnp.float32)
        gamma = 1.0 + 0.1 * jax.random.normal(ks[12], (latent_dim,), jnp.float32)
        beta = 0.1 * jax.random.normal(ks[13], (latent_dim,), jnp.float32)
        mean = jnp.zeros((latent_dim,), jnp.float32)          # BN running stats (eval)
        var = jnp.ones((latent_dim,), jnp.float32)
        gscale = gamma / jnp.sqrt(var + BN_EPS)
        w_fold = w_head * gscale[None, :]                     # (F, L)
        shift = (b_head - mean) * gscale + beta               # (L,)
        self.w_head_folded = jnp.pad(w_fold, ((0, 0), (0, self.l_pad - latent_dim)))
        self.head_shift = jnp.pad(shift, (0, self.l_pad - latent_dim)).reshape(1, self.l_pad)

    def __call__(self, x_nchw):
        B = x_nchw.shape[0]
        p = _im2col_3x3(x_nchw)                               # (B, H*W, 9*Cin) f32
        HW = p.shape[1]
        p = jnp.pad(p, ((0, 0), (0, 0), (0, self.k_pad - p.shape[-1])))
        p = p.astype(jnp.bfloat16)                            # halve patch DMA traffic

        # batch grouping: keep >=2 grid steps on the "parallel" axis so v7x's 2 TCs
        # both get work; on v5e/v6e a single step (TB=B) is marginally (~0.35us) better.
        nb = 2 if B >= 2 else 1
        tb = -(-B // nb)
        b_pad = nb * tb
        if b_pad != B:
            p = jnp.pad(p, ((0, b_pad - B), (0, 0), (0, 0)))

        hw_tile = _pick_hw_tile(HW)
        w_head_eff = self.w_head_folded * jnp.float32(1.0 / HW)   # fold mean-pool 1/HW
        out = encoder_call(p, self.w_stem_folded, self.bn1_shift,
                           self.w_pw_folded, self.bn2_shift,
                           w_head_eff, self.head_shift,
                           batch_tile=tb, hw_tile=hw_tile)        # (nb, tb, Lp)
        out = out.reshape(b_pad, self.l_pad)
        return out[:B, :self.latent_dim]


# ---------------------------------------------------------------------------
# pure-JAX reference (identical math, for numerical sanity check)
# ---------------------------------------------------------------------------
def reference(enc: PallasEncoder, x_nchw):
    p = _im2col_3x3(x_nchw)
    HW = p.shape[1]
    p = jnp.pad(p, ((0, 0), (0, 0), (0, enc.k_pad - p.shape[-1]))).astype(jnp.bfloat16)
    h = jnp.einsum('bmk,kc->bmc', p, enc.w_stem_folded,
                   preferred_element_type=jnp.float32) + enc.bn1_shift
    h = h * jax.nn.sigmoid(h)
    z = jnp.einsum('bmc,cf->bmf', h.astype(jnp.bfloat16), enc.w_pw_folded,
                   preferred_element_type=jnp.float32) + enc.bn2_shift
    z = z * jax.nn.sigmoid(z)
    feats = z.sum(axis=1)                                     # (B, F) sum-pool
    w_head_eff = enc.w_head_folded * jnp.float32(1.0 / HW)
    out = feats @ w_head_eff + enc.head_shift                 # (B, Lp)
    return out[:, :enc.latent_dim]


if __name__ == "__main__":
    key = jax.random.PRNGKey(0)
    k_x, k_p = jax.random.split(key)

    B, C, H, W = 4, 3, 16, 16          # small NCHW image batch (RGB like efficientnet)
    latent_dim = 32
    x = jax.random.normal(k_x, (B, C, H, W), jnp.float32)

    enc = PallasEncoder(latent_dim, key=k_p)
    out = enc(x)
    out = jax.block_until_ready(out)

    ref = reference(enc, x)
    assert out.shape == (B, latent_dim)
    assert jnp.allclose(out, ref, atol=1e-2, rtol=1e-2), \
        f"max abs err {jnp.max(jnp.abs(out - ref))}"

    print("KERNEL_OK")
</pallas_src>

<mosaic_0001>
module attributes {stable_mosaic.version = 11 : i64} {
  func.func @_encoder_kernel(%arg0: i32, %arg1: i32, %arg2: memref<2x256x32xbf16, #tpu.memory_space<vmem>>, %arg3: memref<32x32xbf16, #tpu.memory_space<vmem>>, %arg4: memref<1x32xf32, #tpu.memory_space<vmem>>, %arg5: memref<32x128xbf16, #tpu.memory_space<vmem>>, %arg6: memref<1x128xf32, #tpu.memory_space<vmem>>, %arg7: memref<128x128xf32, #tpu.memory_space<vmem>>, %arg8: memref<1x128xf32, #tpu.memory_space<vmem>>, %arg9: memref<1x2x128xf32, #tpu.memory_space<vmem>>, %arg10: memref<2x128xf32, #tpu.memory_space<vmem>>) attributes {dimension_semantics = [#tpu.dimension_semantics<parallel>, #tpu.dimension_semantics<arbitrary>], iteration_bounds = array<i64: 2, 1>, scalar_prefetch = 0 : i64, scratch_operands = 1 : i64, tpu.core_type = #tpu.core_type<tc>, window_params = [{transform_indices = @transform_0, window_bounds = array<i64: 2, 256, 32>}, {pipeline_mode = #tpu.pipeline_mode<synchronous>, transform_indices = @transform_1, window_bounds = array<i64: 32, 32>}, {pipeline_mode = #tpu.pipeline_mode<synchronous>, transform_indices = @transform_2, window_bounds = array<i64: 1, 32>}, {pipeline_mode = #tpu.pipeline_mode<synchronous>, transform_indices = @transform_3, window_bounds = array<i64: 32, 128>}, {pipeline_mode = #tpu.pipeline_mode<synchronous>, transform_indices = @transform_4, window_bounds = array<i64: 1, 128>}, {pipeline_mode = #tpu.pipeline_mode<synchronous>, transform_indices = @transform_5, window_bounds = array<i64: 128, 128>}, {pipeline_mode = #tpu.pipeline_mode<synchronous>, transform_indices = @transform_6, window_bounds = array<i64: 1, 128>}, {transform_indices = @transform_7, window_bounds = array<i64: 1, 2, 128>}]} {
    %c0_i32 = arith.constant 0 : i32
    %0 = arith.cmpi eq, %arg1, %c0_i32 : i32
    %1 = arith.extui %0 : i1 to i32
    %c0_i32_0 = arith.constant 0 : i32
    %2 = arith.cmpi ne, %1, %c0_i32_0 : i32
    scf.if %2 {
      %cst_21 = arith.constant 0.000000e+00 : f32
      %36 = vector.broadcast %cst_21 : f32 to vector<2x128xf32>
      %c0_22 = arith.constant 0 : index
      %c0_23 = arith.constant 0 : index
      %37 = vector.load %arg10[%c0_22, %c0_23] : memref<2x128xf32, #tpu.memory_space<vmem>>, vector<2x128xf32>
      tpu.vector_store %arg10[%c0_22, %c0_23], %36 {strides = array<i32>} : memref<2x128xf32, #tpu.memory_space<vmem>>, vector<2x128xf32>,
    } else {
    }
    %c0 = arith.constant 0 : index
    %c0_1 = arith.constant 0 : index
    %c0_2 = arith.constant 0 : index
    %3 = vector.load %arg2[%c0, %c0_1, %c0_2] : memref<2x256x32xbf16, #tpu.memory_space<vmem>>, vector<2x256x32xbf16>
    %4 = vector.shape_cast %3 : vector<2x256x32xbf16> to vector<512x32xbf16>
    %c0_3 = arith.constant 0 : index
    %c0_4 = arith.constant 0 : index
    %5 = vector.load %arg3[%c0_3, %c0_4] : memref<32x32xbf16, #tpu.memory_space<vmem>>, vector<32x32xbf16>
    %cst = arith.constant dense<0.000000e+00> : vector<512x32xf32>
    %6 = tpu.matmul %4, %5, %cst {dimension_numbers = #tpu.dot_dimension_numbers<[1], [0], [0], [1], [0, 0, 1, 1], [], []>} : vector<512x32xbf16>, vector<32x32xbf16>, vector<512x32xf32> -> vector<512x32xf32>
    %c0_5 = arith.constant 0 : index
    %c0_6 = arith.constant 0 : index
    %7 = vector.load %arg4[%c0_5, %c0_6] : memref<1x32xf32, #tpu.memory_space<vmem>>, vector<1x32xf32>
    %8 = vector.broadcast %7 : vector<1x32xf32> to vector<512x32xf32>
    %9 = arith.addf %6, %8 : vector<512x32xf32>
    %10 = arith.negf %9 : vector<512x32xf32>
    %11 = math.exp %10 : vector<512x32xf32>
    %cst_7 = arith.constant 1.000000e+00 : f32
    %12 = vector.broadcast %cst_7 : f32 to vector<512x32xf32>
    %13 = arith.addf %12, %11 : vector<512x32xf32>
    %14 = arith.divf %12, %13 : vector<512x32xf32>
    %15 = arith.mulf %9, %14 : vector<512x32xf32>
    %16 = arith.truncf %15 : vector<512x32xf32> to vector<512x32xbf16>
    %c0_8 = arith.constant 0 : index
    %c0_9 = arith.constant 0 : index
    %17 = vector.load %arg5[%c0_8, %c0_9] : memref<32x128xbf16, #tpu.memory_space<vmem>>, vector<32x128xbf16>
    %cst_10 = arith.constant dense<0.000000e+00> : vector<512x128xf32>
    %18 = tpu.matmul %16, %17, %cst_10 {dimension_numbers = #tpu.dot_dimension_numbers<[1], [0], [0], [1], [0, 0, 1, 1], [], []>} : vector<512x32xbf16>, vector<32x128xbf16>, vector<512x128xf32> -> vector<512x128xf32>
    %c0_11 = arith.constant 0 : index
    %c0_12 = arith.constant 0 : index
    %19 = vector.load %arg6[%c0_11, %c0_12] : memref<1x128xf32, #tpu.memory_space<vmem>>, vector<1x128xf32>
    %20 = vector.broadcast %19 : vector<1x128xf32> to vector<512x128xf32>
    %21 = arith.addf %18, %20 : vector<512x128xf32>
    %22 = arith.negf %21 : vector<512x128xf32>
    %23 = math.exp %22 : vector<512x128xf32>
    %cst_13 = arith.constant 1.000000e+00 : f32
    %24 = vector.broadcast %cst_13 : f32 to vector<512x128xf32>
    %25 = arith.addf %24, %23 : vector<512x128xf32>
    %26 = arith.divf %24, %25 : vector<512x128xf32>
    %27 = arith.mulf %21, %26 : vector<512x128xf32>
    %c0_14 = arith.constant 0 : index
    %c0_15 = arith.constant 0 : index
    %28 = vector.load %arg10[%c0_14, %c0_15] : memref<2x128xf32, #tpu.memory_space<vmem>>, vector<2x128xf32>
    %29 = vector.shape_cast %27 : vector<512x128xf32> to vector<2x256x128xf32>
    %cst_16 = arith.constant dense<0.000000e+00> : vector<2x128xf32>
    %30 = vector.multi_reduction <add>, %29, %cst_16 [1] : vector<2x256x128xf32> to vector<2x128xf32>
    %31 = arith.addf %28, %30 : vector<2x128xf32>
    %c0_17 = arith.constant 0 : index
    %c0_18 = arith.constant 0 : index
    %32 = vector.load %arg10[%c0_17, %c0_18] : memref<2x128xf32, #tpu.memory_space<vmem>>, vector<2x128xf32>
    tpu.vector_store %arg10[%c0_17, %c0_18], %31 {strides = array<i32>} : memref<2x128xf32, #tpu.memory_space<vmem>>, vector<2x128xf32>,
    %c0_i32_19 = arith.constant 0 : i32
    %33 = arith.cmpi eq, %arg1, %c0_i32_19 : i32
    %34 = arith.extui %33 : i1 to i32
    %c0_i32_20 = arith.constant 0 : i32
    %35 = arith.cmpi ne, %34, %c0_i32_20 : i32
    scf.if %35 {
      %c0_21 = arith.constant 0 : index
      %c0_22 = arith.constant 0 : index
      %36 = vector.load %arg10[%c0_21, %c0_22] : memref<2x128xf32, #tpu.memory_space<vmem>>, vector<2x128xf32>
      %c0_23 = arith.constant 0 : index
      %c0_24 = arith.constant 0 : index
      %37 = vector.load %arg7[%c0_23, %c0_24] : memref<128x128xf32, #tpu.memory_space<vmem>>, vector<128x128xf32>
      %cst_25 = arith.constant dense<0.000000e+00> : vector<2x128xf32>
      %38 = tpu.matmul %36, %37, %cst_25 {dimension_numbers = #tpu.dot_dimension_numbers<[1], [0], [0], [1], [0, 0, 1, 1], [], []>} : vector<2x128xf32>, vector<128x128xf32>, vector<2x128xf32> -> vector<2x128xf32>
      %c0_26 = arith.constant 0 : index
      %c0_27 = arith.constant 0 : index
      %39 = vector.load %arg8[%c0_26, %c0_27] : memref<1x128xf32, #tpu.memory_space<vmem>>, vector<1x128xf32>
      %40 = vector.broadcast %39 : vector<1x128xf32> to vector<2x128xf32>
      %41 = arith.addf %38, %40 : vector<2x128xf32>
      %c0_28 = arith.constant 0 : index
      %c0_29 = arith.constant 0 : index
      %c0_30 = arith.constant 0 : index
      %42 = vector.load %arg9[%c0_28, %c0_29, %c0_30] : memref<1x2x128xf32, #tpu.memory_space<vmem>>, vector<1x2x128xf32>
      %43 = vector.shape_cast %42 : vector<1x2x128xf32> to vector<2x128xf32>
      %44 = vector.shape_cast %41 : vector<2x128xf32> to vector<1x2x128xf32>
      tpu.vector_store %arg9[%c0_28, %c0_29, %c0_30], %44 {strides = array<i32>} : memref<1x2x128xf32, #tpu.memory_space<vmem>>, vector<1x2x128xf32>,
    } else {
    }
    return
  }
  func.func @transform_0(%arg0: i32, %arg1: i32) -> (i32, i32, i32) {
    %c0_i32 = arith.constant 0 : i32
    %c0_i32_0 = arith.constant 0 : i32
    return %arg0, %arg1, %c0_i32 : i32, i32, i32
  }
  func.func @transform_1(%arg0: i32, %arg1: i32) -> (i32, i32) {
    %c0_i32 = arith.constant 0 : i32
    %c0_i32_0 = arith.constant 0 : i32
    %c0_i32_1 = arith.constant 0 : i32
    return %c0_i32, %c0_i32_0 : i32, i32
  }
  func.func @transform_2(%arg0: i32, %arg1: i32) -> (i32, i32) {
    %c0_i32 = arith.constant 0 : i32
    %c0_i32_0 = arith.constant 0 : i32
    %c0_i32_1 = arith.constant 0 : i32
    return %c0_i32, %c0_i32_0 : i32, i32
  }
  func.func @transform_3(%arg0: i32, %arg1: i32) -> (i32, i32) {
    %c0_i32 = arith.constant 0 : i32
    %c0_i32_0 = arith.constant 0 : i32
    %c0_i32_1 = arith.constant 0 : i32
    return %c0_i32, %c0_i32_0 : i32, i32
  }
  func.func @transform_4(%arg0: i32, %arg1: i32) -> (i32, i32) {
    %c0_i32 = arith.constant 0 : i32
    %c0_i32_0 = arith.constant 0 : i32
    %c0_i32_1 = arith.constant 0 : i32
    return %c0_i32, %c0_i32_0 : i32, i32
  }
  func.func @transform_5(%arg0: i32, %arg1: i32) -> (i32, i32) {
    %c0_i32 = arith.constant 0 : i32
    %c0_i32_0 = arith.constant 0 : i32
    %c0_i32_1 = arith.constant 0 : i32
    return %c0_i32, %c0_i32_0 : i32, i32
  }
  func.func @transform_6(%arg0: i32, %arg1: i32) -> (i32, i32) {
    %c0_i32 = arith.constant 0 : i32
    %c0_i32_0 = arith.constant 0 : i32
    %c0_i32_1 = arith.constant 0 : i32
    return %c0_i32, %c0_i32_0 : i32, i32
  }
  func.func @transform_7(%arg0: i32, %arg1: i32) -> (i32, i32, i32) {
    %c0_i32 = arith.constant 0 : i32
    %c0_i32_0 = arith.constant 0 : i32
    %c0_i32_1 = arith.constant 0 : i32
    return %arg0, %c0_i32, %c0_i32_0 : i32, i32, i32
  }
}

</mosaic_0001>

<bundles_post_ra>
// kernel: tpu_custom_call.1
= control target key start
LH: loop header
LB: loop body
LE: loop exit
PB: predicated region body
PF: predicated region fallthrough
CT: control target
= control target key end

     0   :  { %12 = vsyncpa [#allocation4], 0  ;;  %s4748_s0 = inlined_call_operand.vmem [shape: bf16[4,256,32], index: 0, kind: input, shape index: {}]   ;;  %s4749_s1 = inlined_call_operand.vmem [shape: bf16[32,32], index: 1, kind: input, shape index: {}]   ;;  %s4750_s2 = inlined_call_operand.vmem [shape: f32[1,32], index: 2, kind: input, shape index: {}]   ;;  %s4751_s3 = inlined_call_operand.vmem [shape: bf16[32,128], index: 3, kind: input, shape index: {}]   ;;  %s4752_s4 = inlined_call_operand.vmem [shape: f32[1,128], index: 4, kind: input, shape index: {}]   ;;  %s4753_s5 = inlined_call_operand.vmem [shape: f32[128,128], index: 5, kind: input, shape index: {}]   ;;  %s4754_s6 = inlined_call_operand.vmem [shape: f32[1,128], index: 6, kind: input, shape index: {}]   ;;  %s4755_s7 = inlined_call_operand.hbm [shape: f32[2,2,128], index: 7, kind: output, shape index: {}]  }
   0x1   :  { %14 = vsyncpa [#allocation4 + $0x1], 0  ;;  %s3809_s24 = smov 0   ;;  %s3811_s25 = smov 0  }
   0x2   :  { %s3813_s26 = smov 0   ;;  %s3815_s27 = smov 0  }
   0x3   :  { %s3817_s28 = smov 0   ;;  %s3819_s29 = smov 0  }
   0x4 LB: > { %s2552_s30 = sadd.s32 4294967295, %s3763_s29   ;;  %s2553_s8 = sadd.s32 4294967294, %s3763_s29   ;;  %s3763_s29 = sphi %s3819_s29, %s20_s29   ;;  %s3759_s28 = sphi %s3817_s28, %s4762_s28   ;;  %s3755_s27 = sphi %s3815_s27, %s4761_s27   ;;  %s3751_s26 = sphi %s3813_s26, %s4760_s26   ;;  %s3747_s25 = sphi %s3811_s25, %s4759_s25   ;;  %s3743_s24 = sphi %s3809_s24, %s4758_s24  }
   0x5   : > { %s32_s9 = sadd.s32 1, %s3759_s28  ;;  %s193_s10 = sadd.s32 1, %s3751_s26 }
   0x6   : > { %p34_p0 = scmp.ge.s32.totalorder %s32_s9, 2  ;;  %p203_p1 = scmp.ne.s32.totalorder %s3751_s26, %s3747_s25 }
   0x7   : > { %p204_p2 = scmp.eq.s32.totalorder %s2552_s30, 1  ;;  %p209_p3 = scmp.ne.s32.totalorder %s3747_s25, %s3743_s24 }
   0x8   : > { %s4764_s9 = smov (%p34_p0, %s32_s9), 0  ;;  %p210_p5 = scmp.eq.s32.totalorder %s2553_s8, 1 }
   0x9   : > { %p3849_p4 = por %p204_p2, %p203_p1  ;;  %s190_s12 = ssub.s32 %s3759_s28, %s4764_s9 }
   0xa   : > { %p2556_p6 = scmp.ge.s32.totalorder %s3763_s29, 1  ;;  %p191_p7 = scmp.eq.s32.totalorder %s190_s12, 0 }
   0xb   : > { %p3856_p8 = por %p210_p5, %p209_p3  ;;  %p261_p9 = scmp.lt.s32.totalorder %s3763_s29, 3 }
   0xc   : > { %s3862_s14 = scalar_select %p191_p7, %s3751_s26, %s193_s10  }
   0xd   : > { %p262_p10 = pnand %p2556_p6, %p261_p9 }
   0xe   : > { %v3135_v0 = vld [vmem:[%s4749_s1] sm:$0xff] (!%p262_p10)   ;;  %s2558_s17 = sshll.u32 (!%p262_p10), %s3755_s27, 1  ;;  %v3136_v1 = vld [vmem:[%s4749_s1 + $0x8] sm:$0xff] (!%p262_p10)   ;;  %vm563_vm0 = vcmask (!%p262_p10), 261120   ;;  %vm3767_vm1 = vmmov (!%p262_p10), 0   ;;  %vm2362_vm2 = vcmask (!%p262_p10), 1041409  }
   0xf   : > { %265 = sbr.rel (%p262_p10) target bundleno = 905 (0x389), region = 48  ;;  %p300_p11 = scmp.lt.s32.totalorder (!%p262_p10), %s2558_s17, 3  ;;  %2882 = vmatprep.subr.bf16.mxu0 (!%p262_p10), %v3135_v0  ;;  %v3169_v33 = vld [vmem:[%s4751_s3] sm:$0xff] (!%p262_p10)   ;;  %v3170_v35 = vld [vmem:[%s4751_s3 + $0x8] sm:$0xff] (!%p262_p10)  }
  0x10   : > { %2883 = vmatpush3.bf16.msra.mxu0 (!%p262_p10), %v3135_v0  ;;  %2950 = vmatprep.subr.bf16.mxu1 (!%p262_p10), %v3169_v33  ;;  %v3949_v36 = vld [vmem:[%s4750_s2] ss:$0 sm:$0xff] (!%p262_p10)  ;;  %s295_s16 = sand.u32 (!%p262_p10), 1, %s3747_s25  }
  0x11   : > { %2884 = vmatprep.subr.bf16.mxu0 (!%p262_p10), %v3136_v1  ;;  %2951 = vmatpush3.bf16.msra.mxu1 (!%p262_p10), %v3169_v33  ;;  %s2466_s10 = scalar_lea.sflag (!%p262_p10), [#allocation4], %s295_s16 }
  0x12   : > { %2952 = vmatprep.subr.bf16.mxu1 (!%p262_p10), %v3170_v35 }
  0x14   : > { %2885 = vmatpush3.bf16.msra.mxu0 (!%p262_p10), %v3136_v1 }
  0x15   : > { %2953 = vmatpush3.bf16.msra.mxu1 (!%p262_p10), %v3170_v35 }
  0x16   : > { %s4766_s17 = smov (!%p300_p11, %s2558_s17), 3 }
  0x17   : > { %s2796_s20 = sshll.u32 %s4766_s17, 7  ;;  %s2557_s17 = sshll.u32 %s295_s16, 1 }
  0x18   : > { %s3874_s23 = scalar_lea.vmem %s4748_s0, %s2796_s20  ;;  %s2793_s20 = sshll.u32 %s3755_s27, 5 }
  0x19   : > { %v3137_v2 = vld [vmem:[%s3874_s23] sm:$0xff]   ;;  %v3138_v3 = vld [vmem:[%s3874_s23 + $0x8] sm:$0xff]   ;;  %v3139_v4 = vld [vmem:[%s3874_s23 + $0x10] sm:$0xff]   ;;  %s297_s21 = scalar_lea.vmem [#allocation3], %s2557_s17  ;;  %s4701_s8 = scalar_lea.hbm %s4755_s7, %s2793_s20 }
  0x1a   : > { %2886 = vmatprep.mubr.msk.bf16.mxu0 %vm563_vm0, %v3137_v2  ;;  %v3140_v5 = vld [vmem:[%s3874_s23 + $0x18] sm:$0xff]   ;;  %v3141_v6 = vld [vmem:[%s3874_s23 + $0x20] sm:$0xff]   ;;  %v3142_v7 = vld [vmem:[%s3874_s23 + $0x28] sm:$0xff]   ;;  %s2479_s22 = sshll.u32 %s297_s21, 4  ;;  %s3768_s27 = smov [#allocation3]   ;;  %s4703_s22 = int_to_ptr.vmem [resolvable:$true] %s2479_s22 }
  0x1b   : > { %2887 = vmatmul.mubr.msk.bf16.vlgmr.msra.gmra.mrb[0].mxu0 %vm563_vm0, %v3138_v3  ;;  %v3143_v8 = vld [vmem:[%s3874_s23 + $0x30] sm:$0xff]   ;;  %v3144_v9 = vld [vmem:[%s3874_s23 + $0x38] sm:$0xff]   ;;  %v3145_v10 = vld [vmem:[%s3874_s23 + $0x40] sm:$0xff]   ;;  %s3685_s12 = scalar_lea.vmem %s4703_s22, 32  ;;  %s3689_s15 = sshll.u32 %s3768_s27, 4  ;;  %s3690_s15 = int_to_ptr.vmem [resolvable:$false] %s3689_s15 }
  0x1c   : > { %2890 = vmatprep.mubr.msk.bf16.mxu0 %vm563_vm0, %v3139_v4  ;;  %v3146_v11 = vld [vmem:[%s3874_s23 + $0x48] sm:$0xff]   ;;  %v3147_v12 = vld [vmem:[%s3874_s23 + $0x50] sm:$0xff]   ;;  %v3148_v13 = vld [vmem:[%s3874_s23 + $0x58] sm:$0xff]   ;;  %p3686_p12 = scmp.ne.s32.totalorder %s4703_s22, %s3685_s12  ;;  %s3691_s17 = scalar_lea.vmem %s3690_s15, 64 }
  0x1d   : > { %v3149_v14 = vld [vmem:[%s3874_s23 + $0x60] sm:$0xff]   ;;  %v3150_v15 = vld [vmem:[%s3874_s23 + $0x68] sm:$0xff]   ;;  %v3151_v16 = vld [vmem:[%s3874_s23 + $0x70] sm:$0xff]   ;;  %p3692_p1 = scmp.lt.s32.totalorder %s4703_s22, %s3690_s15  ;;  %p3693_p2 = scmp.lt.s32.totalorder %s3691_s17, %s3685_s12 }
  0x1e   : > { %v3152_v17 = vld [vmem:[%s3874_s23 + $0x78] sm:$0xff]   ;;  %v3153_v18 = vld [vmem:[%s3874_s23 + $0x80] sm:$0xff]   ;;  %v3154_v19 = vld [vmem:[%s3874_s23 + $0x88] sm:$0xff]   ;;  %p3687_p13 = pnand %p3686_p12, %p3849_p4 }
  0x1f   : > { %v3155_v20 = vld [vmem:[%s3874_s23 + $0x90] sm:$0xff]   ;;  %v3156_v21 = vld [vmem:[%s3874_s23 + $0x98] sm:$0xff]   ;;  %v3157_v22 = vld [vmem:[%s3874_s23 + $0xa0] sm:$0xff]   ;;  %p3694_p3 = por %p3693_p2, %p3692_p1 }
  0x20   : > { %v3158_v23 = vld [vmem:[%s3874_s23 + $0xa8] sm:$0xff]   ;;  %v3159_v24 = vld [vmem:[%s3874_s23 + $0xb0] sm:$0xff]   ;;  %v3160_v25 = vld [vmem:[%s3874_s23 + $0xb8] sm:$0xff]   ;;  %p3688_p0 = pneg %p3687_p13 }
  0x21   : > { %v3161_v26 = vld [vmem:[%s3874_s23 + $0xc0] sm:$0xff]   ;;  %v3162_v27 = vld [vmem:[%s3874_s23 + $0xc8] sm:$0xff]   ;;  %v3163_v28 = vld [vmem:[%s3874_s23 + $0xd0] sm:$0xff]  }
  0x22   : > { %v3164_v29 = vld [vmem:[%s3874_s23 + $0xd8] sm:$0xff]   ;;  %v3165_v30 = vld [vmem:[%s3874_s23 + $0xe0] sm:$0xff]   ;;  %v3166_v31 = vld [vmem:[%s3874_s23 + $0xe8] sm:$0xff]   ;;  %p3695_p5 = pnand %p3694_p3, %p3688_p0 }
  0x23   : > { %2891 = vmatmul.mubr.msk.bf16.gmra.mrb[4].mxu0 %vm563_vm0, %v3140_v5  ;;  %v3167_v32 = vld [vmem:[%s3874_s23 + $0xf0] sm:$0xff]   ;;  %v3168_v34 = vld [vmem:[%s3874_s23 + $0xf8] sm:$0xff]  }
  0x24   : > { %2894 = vmatprep.mubr.msk.bf16.mxu0 %vm563_vm0, %v3141_v6 }
  0x2b   : > { %2895 = vmatmul.mubr.msk.bf16.gmra.mrb[8].mxu0 %vm563_vm0, %v3142_v7 }
  0x2c   : > { %2898 = vmatprep.mubr.msk.bf16.mxu0 %vm563_vm0, %v3143_v8 }
  0x33   : > { %2899 = vmatmul.mubr.msk.bf16.gmra.mrb[12].mxu0 %vm563_vm0, %v3144_v9 }
  0x34   : > { %2902 = vmatprep.mubr.msk.bf16.mxu0 %vm563_vm0, %v3145_v10 }
  0x3b   : > { %2903 = vmatmul.mubr.msk.bf16.gmra.mrb[16].mxu0 %vm563_vm0, %v3146_v11 }
  0x3c   : > { %2906 = vmatprep.mubr.msk.bf16.mxu0 %vm563_vm0, %v3147_v12 }
  0x43   : > { %2907 = vmatmul.mubr.msk.bf16.gmra.mrb[20].mxu0 %vm563_vm0, %v3148_v13 }
  0x44   : > { %2910 = vmatprep.mubr.msk.bf16.mxu0 %vm563_vm0, %v3149_v14 }
  0x4b   : > { %2911 = vmatmul.mubr.msk.bf16.gmra.mrb[24].mxu0 %vm563_vm0, %v3150_v15 }
  0x4c   : > { %2914 = vmatprep.mubr.msk.bf16.mxu0 %vm563_vm0, %v3151_v16 }
  0x53   : > { %2915 = vmatmul.mubr.msk.bf16.gmra.mrb[28].mxu0 %vm563_vm0, %v3152_v17 }
  0x54   : > { %2918 = vmatprep.mubr.msk.bf16.mxu0 %vm563_vm0, %v3153_v18 }
  0x5b   : > { %2919 = vmatmul.mubr.msk.bf16.gmra.mrb[32].mxu0 %vm563_vm0, %v3154_v19 }
  0x5c   : > { %2922 = vmatprep.mubr.msk.bf16.mxu0 %vm563_vm0, %v3155_v20 }
  0x63   : > { %2923 = vmatmul.mubr.msk.bf16.gmra.mrb[36].mxu0 %vm563_vm0, %v3156_v21 }
  0x64   : > { %2926 = vmatprep.mubr.msk.bf16.mxu0 %vm563_vm0, %v3157_v22 }
  0x6b   : > { %2927 = vmatmul.mubr.msk.bf16.gmra.mrb[40].mxu0 %vm563_vm0, %v3158_v23 }
  0x6c   : > { %2930 = vmatprep.mubr.msk.bf16.mxu0 %vm563_vm0, %v3159_v24 }
  0x73   : > { %2931 = vmatmul.mubr.msk.bf16.gmra.mrb[44].mxu0 %vm563_vm0, %v3160_v25 }
  0x74   : > { %2934 = vmatprep.mubr.msk.bf16.mxu0 %vm563_vm0, %v3161_v26 }
  0x7b   : > { %2935 = vmatmul.mubr.msk.bf16.gmra.mrb[48].mxu0 %vm563_vm0, %v3162_v27 }
  0x7c   : > { %2938 = vmatprep.mubr.msk.bf16.mxu0 %vm563_vm0, %v3163_v28 }
  0x83   : > { %2939 = vmatmul.mubr.msk.bf16.gmra.mrb[52].mxu0 %vm563_vm0, %v3164_v29 }
  0x84   : > { %2942 = vmatprep.mubr.msk.bf16.mxu0 %vm563_vm0, %v3165_v30 }
  0x8b   : > { %2943 = vmatmul.mubr.msk.bf16.gmra.mrb[56].mxu0 %vm563_vm0, %v3166_v31 }
  0x8c   : > { %2946 = vmatprep.mubr.msk.bf16.mxu0 %vm563_vm0, %v3167_v32 }
  0x93   : > { %2947 = vmatmul.mubr.msk.bf16.gmra.mrb[60].mxu0 %vm563_vm0, %v3168_v34 }
  0xee   : > { %v2888_v37 = vpop.f32.mrb[0].mxu0 }
  0xef   : > { %v3952_v38 = vadd.f32 %v2888_v37, %v3949_v36  ;;  %v694_v39 = vpop.f32.mrb[1].mxu0 }
  0xf0   : > { %v3955_v40 = vadd.f32 %v3949_v36, %v694_v39  ;;  %v2889_v41 = vpop.f32.mrb[2].mxu0 }
  0xf1   : > { %v2630_v42 = vmul.f32 -1.442695, %v3952_v38  ;;  %v3959_v43 = vadd.f32 %v2889_v41, %v3949_v36  ;;  %v697_v44 = vpop.f32.mrb[3].mxu0 }
  0xf2   : > { %v2628_v45 = vmul.f32 -1.442695, %v3955_v40  ;;  %v3963_v46 = vadd.f32 %v3949_v36, %v697_v44 }
  0xf3   : > { %3171 = vpow2.f32 %v2630_v42  ;;  %v2631_v47 = vmul.f32 -1.442695, %v3959_v43 }
  0xf4   : > { %3173 = vpow2.f32 %v2628_v45  ;;  %v2629_v48 = vmul.f32 -1.442695, %v3963_v46 }
  0xf5   : > { %3175 = vpow2.f32 %v2631_v47 }
  0xf6   : > { %3177 = vpow2.f32 %v2629_v48  ;;  %v2892_v49 = vpop.f32.mrb[4].mxu0 }
  0xf7   : > { %v3968_v50 = vadd.f32 %v2892_v49, %v3949_v36  ;;  %v710_v51 = vpop.f32.mrb[5].mxu0 }
  0xf8   : > { %v3971_v52 = vadd.f32 %v3949_v36, %v710_v51  ;;  %v2893_v53 = vpop.f32.mrb[6].mxu0 }
  0xf9   : > { %v2634_v54 = vmul.f32 -1.442695, %v3968_v50  ;;  %v3975_v55 = vadd.f32 %v2893_v53, %v3949_v36  ;;  %v713_v56 = vpop.f32.mrb[7].mxu0 }
  0xfa   : > { %v2632_v57 = vmul.f32 -1.442695, %v3971_v52  ;;  %v3979_v58 = vadd.f32 %v3949_v36, %v713_v56 }
  0xfb   : > { %3179 = vpow2.f32 %v2634_v54  ;;  %v2635_v59 = vmul.f32 -1.442695, %v3975_v55 }
  0xfc   : > { %3181 = vpow2.f32 %v2632_v57  ;;  %v2633_v60 = vmul.f32 -1.442695, %v3979_v58 }
  0xfd   : > { %v3172_v61 = vpop.eup %3171  ;;  %3183 = vpow2.f32 %v2635_v59 }
  0xfe   : > { %v3174_v62 = vpop.eup %3173  ;;  %v1143_v63 = vadd.f32 1.0, %v3172_v61  ;;  %3185 = vpow2.f32 %v2633_v60  ;;  %v2896_v0 = vpop.f32.mrb[8].mxu0 }
  0xff   : > { %v3176_v1 = vpop.eup %3175  ;;  %v1141_v2 = vadd.f32 1.0, %v3174_v62  ;;  %v3984_v3 = vadd.f32 %v2896_v0, %v3949_v36  ;;  %v726_v4 = vpop.f32.mrb[9].mxu0 }
 0x100   : > { %v3178_v5 = vpop.eup %3177  ;;  %3187 = vrcp.f32 %v1143_v63  ;;  %v1144_v6 = vadd.f32 1.0, %v3176_v1  ;;  %v3987_v7 = vadd.f32 %v3949_v36, %v726_v4  ;;  %v2897_v8 = vpop.f32.mrb[10].mxu0 }
 0x101   : > { %3189 = vrcp.f32 %v1141_v2  ;;  %v1142_v9 = vadd.f32 1.0, %v3178_v5  ;;  %v2638_v10 = vmul.f32 -1.442695, %v3984_v3  ;;  %v3991_v11 = vadd.f32 %v2897_v8, %v3949_v36  ;;  %v729_v12 = vpop.f32.mrb[11].mxu0 }
 0x102   : > { %3191 = vrcp.f32 %v1144_v6  ;;  %v2636_v13 = vmul.f32 -1.442695, %v3987_v7  ;;  %v3995_v14 = vadd.f32 %v3949_v36, %v729_v12 }
 0x103   : > { %3193 = vrcp.f32 %v1142_v9  ;;  %v2639_v15 = vmul.f32 -1.442695, %v3991_v11 }
 0x104   : > { %3195 = vpow2.f32 %v2638_v10  ;;  %v2637_v16 = vmul.f32 -1.442695, %v3995_v14 }
 0x105   : > { %v3180_v17 = vpop.eup %3179  ;;  %3197 = vpow2.f32 %v2636_v13 }
 0x106   : > { %v3182_v18 = vpop.eup %3181  ;;  %v1147_v19 = vadd.f32 1.0, %v3180_v17  ;;  %3199 = vpow2.f32 %v2639_v15  ;;  %v2900_v20 = vpop.f32.mrb[12].mxu0 }
 0x107   : > { %v3184_v21 = vpop.eup %3183  ;;  %v1145_v22 = vadd.f32 1.0, %v3182_v18  ;;  %3201 = vpow2.f32 %v2637_v16  ;;  %v4000_v23 = vadd.f32 %v2900_v20, %v3949_v36  ;;  %v742_v24 = vpop.f32.mrb[13].mxu0 }
 0x108   : > { %v3186_v25 = vpop.eup %3185  ;;  %3203 = vrcp.f32 %v1147_v19  ;;  %v1148_v26 = vadd.f32 1.0, %v3184_v21  ;;  %v4003_v27 = vadd.f32 %v3949_v36, %v742_v24  ;;  %v2901_v28 = vpop.f32.mrb[14].mxu0 }
 0x109   : > { %3205 = vrcp.f32 %v1145_v22  ;;  %v1146_v29 = vadd.f32 1.0, %v3186_v25  ;;  %v2642_v30 = vmul.f32 -1.442695, %v4000_v23  ;;  %v4007_v31 = vadd.f32 %v2901_v28, %v3949_v36  ;;  %v745_v32 = vpop.f32.mrb[15].mxu0 }
 0x10a   : > { %v3188_v33 = vpop.eup %3187  ;;  %3207 = vrcp.f32 %v1148_v26  ;;  %v2640_v34 = vmul.f32 -1.442695, %v4003_v27  ;;  %v4011_v35 = vadd.f32 %v3949_v36, %v745_v32 }
 0x10b   : > { %v3190_v37 = vpop.eup %3189  ;;  %3209 = vrcp.f32 %v1146_v29  ;;  %v2643_v39 = vmul.f32 -1.442695, %v4007_v31  ;;  %v1335_v45 = vmul.f32 %v3188_v33, %v3952_v38 }
 0x10c   : > { %v3192_v41 = vpop.eup %3191  ;;  %3211 = vpow2.f32 %v2642_v30  ;;  %v2641_v42 = vmul.f32 -1.442695, %v4011_v35  ;;  %v1333_v49 = vmul.f32 %v3190_v37, %v3955_v40 }
 0x10d   : > { %v3194_v44 = vpop.eup %3193  ;;  %v1336_v47 = vmul.f32 %v3192_v41, %v3959_v43  ;;  %3213 = vpow2.f32 %v2640_v34 }
 0x10e   : > { %v3196_v48 = vpop.eup %3195  ;;  %v1334_v51 = vmul.f32 %v3194_v44, %v3963_v46  ;;  %3215 = vpow2.f32 %v2643_v39  ;;  %v2904_v53 = vpop.f32.mrb[16].mxu0 }
 0x10f   : > { %v3198_v54 = vpop.eup %3197  ;;  %v1398_v56 = vpack.c.bf16 %v1336_v47, %v1335_v45  ;;  %v1151_v57 = vadd.f32 1.0, %v3196_v48  ;;  %3217 = vpow2.f32 %v2641_v42  ;;  %v4020_v59 = vadd.f32 %v2904_v53, %v3949_v36  ;;  %v758_v60 = vpop.f32.mrb[17].mxu0 }
 0x110   : > { %v3200_v61 = vpop.eup %3199  ;;  %v1149_v38 = vadd.f32 1.0, %v3198_v54  ;;  %v4023_v43 = vadd.f32 %v3949_v36, %v758_v60  ;;  %v2905_v62 = vpop.f32.mrb[18].mxu0  ;;  %v1397_v63 = vpack.c.bf16 %v1334_v51, %v1333_v49 }
 0x111   : > { %v3202_v40 = vpop.eup %3201  ;;  %3219 = vrcp.f32 %v1151_v57  ;;  %v1152_v46 = vadd.f32 1.0, %v3200_v61  ;;  %v2646_v0 = vmul.f32 -1.442695, %v4020_v59  ;;  %v4027_v1 = vadd.f32 %v2905_v62, %v3949_v36  ;;  %v761_v2 = vpop.f32.mrb[19].mxu0 }
 0x112   : > { %v3204_v4 = vpop.eup %3203  ;;  %3221 = vrcp.f32 %v1149_v38  ;;  %v1150_v5 = vadd.f32 1.0, %v3202_v40  ;;  %v2644_v6 = vmul.f32 -1.442695, %v4023_v43  ;;  %v4031_v8 = vadd.f32 %v3949_v36, %v761_v2  ;;  %2954 = vmatprep.mubr.msk.bf16.mxu1 %vm563_vm0, %v1397_v63 }
 0x113   : > { %v3206_v9 = vpop.eup %3205  ;;  %3223 = vrcp.f32 %v1152_v46  ;;  %v2647_v10 = vmul.f32 -1.442695, %v4027_v1  ;;  %2955 = vmatmul.mubr.msk.bf16.vlgmr.msra.gmra.mrb[0].mxu1 %vm563_vm0, %v1398_v56  ;;  %v1339_v16 = vmul.f32 %v3204_v4, %v3968_v50 }
 0x114   : > { %v3208_v12 = vpop.eup %3207  ;;  %3225 = vrcp.f32 %v1150_v5  ;;  %v2645_v13 = vmul.f32 -1.442695, %v4031_v8  ;;  %v1337_v19 = vmul.f32 %v3206_v9, %v3971_v52 }
 0x115   : > { %v3210_v15 = vpop.eup %3209  ;;  %v1340_v17 = vmul.f32 %v3208_v12, %v3975_v55  ;;  %3227 = vpow2.f32 %v2646_v0 }
 0x116   : > { %v3212_v18 = vpop.eup %3211  ;;  %v1338_v20 = vmul.f32 %v3210_v15, %v3979_v58  ;;  %3229 = vpow2.f32 %v2644_v6  ;;  %v2908_v21 = vpop.f32.mrb[20].mxu0 }
 0x117   : > { %v3214_v22 = vpop.eup %3213  ;;  %v1400_v24 = vpack.c.bf16 %v1340_v17, %v1339_v16  ;;  %v1155_v25 = vadd.f32 1.0, %v3212_v18  ;;  %3231 = vpow2.f32 %v2647_v10  ;;  %v4042_v26 = vadd.f32 %v2908_v21, %v3949_v36  ;;  %v774_v28 = vpop.f32.mrb[21].mxu0 }
 0x118   : > { %v3216_v29 = vpop.eup %3215  ;;  %v1399_v50 = vpack.c.bf16 %v1338_v20, %v1337_v19  ;;  %v1153_v30 = vadd.f32 1.0, %v3214_v22  ;;  %3233 = vpow2.f32 %v2645_v13  ;;  %v4045_v55 = vadd.f32 %v3949_v36, %v774_v28  ;;  %v2909_v52 = vpop.f32.mrb[22].mxu0 }
 0x119   : > { %v3218_v32 = vpop.eup %3217  ;;  %3235 = vrcp.f32 %v1155_v25  ;;  %v1156_v58 = vadd.f32 1.0, %v3216_v29  ;;  %v2650_v33 = vmul.f32 -1.442695, %v4042_v26  ;;  %v4049_v34 = vadd.f32 %v2909_v52, %v3949_v36  ;;  %v777_v37 = vpop.f32.mrb[23].mxu0 }
 0x11a   : > { %3237 = vrcp.f32 %v1153_v30  ;;  %v1154_v39 = vadd.f32 1.0, %v3218_v32  ;;  %v2648_v41 = vmul.f32 -1.442695, %v4045_v55  ;;  %v4053_v42 = vadd.f32 %v3949_v36, %v777_v37  ;;  %2958 = vmatprep.mubr.msk.bf16.mxu1 %vm563_vm0, %v1399_v50 }
 0x11b   : > { %v3220_v44 = vpop.eup %3219  ;;  %3239 = vrcp.f32 %v1156_v58  ;;  %v2651_v45 = vmul.f32 -1.442695, %v4049_v34  ;;  %2959 = vmatmul.mubr.msk.bf16.gmra.mrb[4].mxu1 %vm563_vm0, %v1400_v24 }
 0x11c   : > { %v3222_v47 = vpop.eup %3221  ;;  %3241 = vrcp.f32 %v1154_v39  ;;  %v2649_v48 = vmul.f32 -1.442695, %v4053_v42  ;;  %v1343_v53 = vmul.f32 %v3220_v44, %v3984_v3 }
 0x11d   : > { %v3224_v49 = vpop.eup %3223  ;;  %3243 = vpow2.f32 %v2650_v33  ;;  %v1341_v60 = vmul.f32 %v3222_v47, %v3987_v7 }
 0x11e   : > { %v3226_v51 = vpop.eup %3225  ;;  %v1344_v54 = vmul.f32 %v3224_v49, %v3991_v11  ;;  %3245 = vpow2.f32 %v2648_v41  ;;  %v2912_v56 = vpop.f32.mrb[24].mxu0 }
 0x11f   : > { %v3228_v57 = vpop.eup %3227  ;;  %v1342_v61 = vmul.f32 %v3226_v51, %v3995_v14  ;;  %3247 = vpow2.f32 %v2651_v45  ;;  %v4064_v38 = vadd.f32 %v2912_v56, %v3949_v36  ;;  %v790_v62 = vpop.f32.mrb[25].mxu0 }
 0x120   : > { %v3230_v63 = vpop.eup %3229  ;;  %v1402_v40 = vpack.c.bf16 %v1344_v54, %v1343_v53  ;;  %v1159_v46 = vadd.f32 1.0, %v3228_v57  ;;  %3249 = vpow2.f32 %v2649_v48  ;;  %v4067_v3 = vadd.f32 %v3949_v36, %v790_v62  ;;  %v2913_v11 = vpop.f32.mrb[26].mxu0 }
 0x121   : > { %v3232_v0 = vpop.eup %3231  ;;  %v1401_v2 = vpack.c.bf16 %v1342_v61, %v1341_v60  ;;  %v1157_v4 = vadd.f32 1.0, %v3230_v63  ;;  %v4070_v7 = vadd.f32 %v2913_v11, %v3949_v36  ;;  %v793_v14 = vpop.f32.mrb[27].mxu0  ;;  %v2654_v9 = vmul.f32 -1.442695, %v4064_v38 }
 0x122   : > { %v3234_v5 = vpop.eup %3233  ;;  %3251 = vrcp.f32 %v1159_v46  ;;  %v1160_v6 = vadd.f32 1.0, %v3232_v0  ;;  %v4074_v10 = vadd.f32 %v3949_v36, %v793_v14  ;;  %v2652_v15 = vmul.f32 -1.442695, %v4067_v3 }
 0x123   : > { %v3236_v12 = vpop.eup %3235  ;;  %3253 = vrcp.f32 %v1157_v4  ;;  %v1158_v13 = vadd.f32 1.0, %v3234_v5  ;;  %2962 = vmatprep.mubr.msk.bf16.mxu1 %vm563_vm0, %v1401_v2  ;;  %v2655_v17 = vmul.f32 -1.442695, %v4070_v7 }
 0x124   : > { %v3238_v16 = vpop.eup %3237  ;;  %3255 = vrcp.f32 %v1160_v6  ;;  %2963 = vmatmul.mubr.msk.bf16.gmra.mrb[8].mxu1 %vm563_vm0, %v1402_v40  ;;  %v2653_v19 = vmul.f32 -1.442695, %v4074_v10  ;;  %v1347_v21 = vmul.f32 %v3236_v12, %v4000_v23 }
 0x125   : > { %v3240_v18 = vpop.eup %3239  ;;  %3257 = vrcp.f32 %v1158_v13  ;;  %v1345_v28 = vmul.f32 %v3238_v16, %v4003_v27 }
 0x126   : > { %v3242_v20 = vpop.eup %3241  ;;  %v1348_v22 = vmul.f32 %v3240_v18, %v4007_v31  ;;  %3259 = vpow2.f32 %v2654_v9  ;;  %v2916_v24 = vpop.f32.mrb[28].mxu0 }
 0x127   : > { %v3244_v25 = vpop.eup %3243  ;;  %v1346_v29 = vmul.f32 %v3242_v20, %v4011_v35  ;;  %3261 = vpow2.f32 %v2652_v15  ;;  %v4086_v50 = vadd.f32 %v2916_v24, %v3949_v36  ;;  %v806_v30 = vpop.f32.mrb[29].mxu0 }
 0x128   : > { %v3246_v52 = vpop.eup %3245  ;;  %v1404_v32 = vpack.c.bf16 %v1348_v22, %v1347_v21  ;;  %v1163_v58 = vadd.f32 1.0, %v3244_v25  ;;  %3263 = vpow2.f32 %v2655_v17  ;;  %v4089_v23 = vadd.f32 %v3949_v36, %v806_v30  ;;  %v2917_v31 = vpop.f32.mrb[30].mxu0 }
 0x129   : > { %v3248_v33 = vpop.eup %3247  ;;  %v1403_v37 = vpack.c.bf16 %v1346_v29, %v1345_v28  ;;  %v1161_v39 = vadd.f32 1.0, %v3246_v52  ;;  %3265 = vpow2.f32 %v2653_v19  ;;  %v809_v27 = vpop.f32.mrb[31].mxu0  ;;  %v2658_v44 = vmul.f32 -1.442695, %v4086_v50 }
 0x12a   : > { %v3250_v41 = vpop.eup %3249  ;;  %3267 = vrcp.f32 %v1163_v58  ;;  %v1164_v35 = vadd.f32 1.0, %v3248_v33  ;;  %v4093_v45 = vadd.f32 %v2917_v31, %v3949_v36  ;;  %v2656_v48 = vmul.f32 -1.442695, %v4089_v23 }
 0x12b   : > { %3269 = vrcp.f32 %v1161_v39  ;;  %v1162_v47 = vadd.f32 1.0, %v3250_v41  ;;  %v4097_v49 = vadd.f32 %v3949_v36, %v809_v27  ;;  %2966 = vmatprep.mubr.msk.bf16.mxu1 %vm563_vm0, %v1403_v37 }
 0x12c   : > { %v3252_v51 = vpop.eup %3251  ;;  %3271 = vrcp.f32 %v1164_v35  ;;  %v2659_v53 = vmul.f32 -1.442695, %v4093_v45  ;;  %2967 = vmatmul.mubr.msk.bf16.gmra.mrb[12].mxu1 %vm563_vm0, %v1404_v32 }
 0x12d   : > { %v3254_v54 = vpop.eup %3253  ;;  %3273 = vrcp.f32 %v1162_v47  ;;  %v2657_v56 = vmul.f32 -1.442695, %v4097_v49  ;;  %v1351_v62 = vmul.f32 %v3252_v51, %v4020_v59 }
 0x12e   : > { %v3256_v57 = vpop.eup %3255  ;;  %3275 = vpow2.f32 %v2658_v44  ;;  %v2920_v60 = vpop.f32.mrb[32].mxu0  ;;  %v1349_v0 = vmul.f32 %v3254_v54, %v4023_v43 }
 0x12f   : > { %v3258_v61 = vpop.eup %3257  ;;  %v1352_v63 = vmul.f32 %v3256_v57, %v4027_v1  ;;  %3277 = vpow2.f32 %v2656_v48  ;;  %v4106_v40 = vadd.f32 %v2920_v60, %v3949_v36  ;;  %v822_v46 = vpop.f32.mrb[33].mxu0 }
 0x130   : > { %v3260_v11 = vpop.eup %3259  ;;  %v1350_v2 = vmul.f32 %v3258_v61, %v4031_v8  ;;  %3279 = vpow2.f32 %v2659_v53  ;;  %v4111_v4 = vadd.f32 %v3949_v36, %v822_v46  ;;  %v2921_v14 = vpop.f32.mrb[34].mxu0 }
 0x131   : > { %v3262_v5 = vpop.eup %3261  ;;  %v1406_v6 = vpack.c.bf16 %v1352_v63, %v1351_v62  ;;  %v1167_v59 = vadd.f32 1.0, %v3260_v11  ;;  %3281 = vpow2.f32 %v2657_v56  ;;  %v825_v1 = vpop.f32.mrb[35].mxu0  ;;  %v4114_v15 = vadd.f32 %v2921_v14, %v3949_v36 }
 0x132   : > { %v3264_v9 = vpop.eup %3263  ;;  %v1405_v12 = vpack.c.bf16 %v1350_v2, %v1349_v0  ;;  %v1165_v13 = vadd.f32 1.0, %v3262_v5  ;;  %v2662_v8 = vmul.f32 -1.442695, %v4106_v40  ;;  %v4118_v17 = vadd.f32 %v3949_v36, %v825_v1 }
 0x133   : > { %v3266_v16 = vpop.eup %3265  ;;  %3283 = vrcp.f32 %v1167_v59  ;;  %v1168_v43 = vadd.f32 1.0, %v3264_v9  ;;  %v2660_v20 = vmul.f32 -1.442695, %v4111_v4  ;;  %v2663_v22 = vmul.f32 -1.442695, %v4114_v15 }
 0x134   : > { %v3268_v18 = vpop.eup %3267  ;;  %3285 = vrcp.f32 %v1165_v13  ;;  %v1166_v19 = vadd.f32 1.0, %v3266_v16  ;;  %2970 = vmatprep.mubr.msk.bf16.mxu1 %vm563_vm0, %v1405_v12  ;;  %v2661_v25 = vmul.f32 -1.442695, %v4118_v17 }
 0x135   : > { %v3270_v21 = vpop.eup %3269  ;;  %3287 = vrcp.f32 %v1168_v43  ;;  %2971 = vmatmul.mubr.msk.bf16.gmra.mrb[16].mxu1 %vm563_vm0, %v1406_v6  ;;  %v1355_v30 = vmul.f32 %v3268_v18, %v4042_v26 }
 0x136   : > { %v3272_v24 = vpop.eup %3271  ;;  %3289 = vrcp.f32 %v1166_v19  ;;  %v2924_v28 = vpop.f32.mrb[36].mxu0  ;;  %v1353_v33 = vmul.f32 %v3270_v21, %v4045_v55 }
 0x137   : > { %v3274_v29 = vpop.eup %3273  ;;  %v1356_v52 = vmul.f32 %v3272_v24, %v4049_v34  ;;  %3291 = vpow2.f32 %v2662_v8  ;;  %v4128_v32 = vadd.f32 %v2924_v28, %v3949_v36  ;;  %v838_v58 = vpop.f32.mrb[37].mxu0 }
 0x138   : > { %v3276_v31 = vpop.eup %3275  ;;  %v1354_v37 = vmul.f32 %v3274_v29, %v4053_v42  ;;  %3293 = vpow2.f32 %v2660_v20  ;;  %v4133_v39 = vadd.f32 %v3949_v36, %v838_v58  ;;  %v2925_v27 = vpop.f32.mrb[38].mxu0 }
 0x139   : > { %v3278_v41 = vpop.eup %3277  ;;  %v1408_v35 = vpack.c.bf16 %v1356_v52, %v1355_v30  ;;  %v1171_v26 = vadd.f32 1.0, %v3276_v31  ;;  %3295 = vpow2.f32 %v2663_v22  ;;  %v841_v34 = vpop.f32.mrb[39].mxu0  ;;  %v2666_v51 = vmul.f32 -1.442695, %v4128_v32 }
 0x13a   : > { %v3280_v44 = vpop.eup %3279  ;;  %v1407_v47 = vpack.c.bf16 %v1354_v37, %v1353_v33  ;;  %v1169_v48 = vadd.f32 1.0, %v3278_v41  ;;  %3297 = vpow2.f32 %v2661_v25  ;;  %v4137_v42 = vadd.f32 %v2925_v27, %v3949_v36 }
 0x13b   : > { %v3282_v53 = vpop.eup %3281  ;;  %3299 = vrcp.f32 %v1171_v26  ;;  %v1172_v55 = vadd.f32 1.0, %v3280_v44  ;;  %v4140_v54 = vadd.f32 %v3949_v36, %v841_v34  ;;  %v2664_v57 = vmul.f32 -1.442695, %v4133_v39 }
 0x13c   : > { %3301 = vrcp.f32 %v1169_v48  ;;  %v1170_v56 = vadd.f32 1.0, %v3282_v53  ;;  %2974 = vmatprep.mubr.msk.bf16.mxu1 %vm563_vm0, %v1407_v47  ;;  %v2667_v61 = vmul.f32 -1.442695, %v4137_v42 }
 0x13d   : > { %v3284_v60 = vpop.eup %3283  ;;  %3303 = vrcp.f32 %v1172_v55  ;;  %2975 = vmatmul.mubr.msk.bf16.gmra.mrb[20].mxu1 %vm563_vm0, %v1408_v35  ;;  %v2665_v63 = vmul.f32 -1.442695, %v4140_v54 }
 0x13e   : > { %v3286_v62 = vpop.eup %3285  ;;  %3305 = vrcp.f32 %v1170_v56  ;;  %v2928_v46 = vpop.f32.mrb[40].mxu0  ;;  %v1359_v0 = vmul.f32 %v3284_v60, %v4064_v38 }
 0x13f   : > { %v3288_v11 = vpop.eup %3287  ;;  %3307 = vpow2.f32 %v2666_v51  ;;  %v4149_v2 = vadd.f32 %v2928_v46, %v3949_v36  ;;  %v854_v14 = vpop.f32.mrb[41].mxu0  ;;  %v1357_v6 = vmul.f32 %v3286_v62, %v4067_v3 }
 0x140   : > { %v3290_v5 = vpop.eup %3289  ;;  %v1360_v59 = vmul.f32 %v3288_v11, %v4070_v7  ;;  %3309 = vpow2.f32 %v2664_v57  ;;  %v4154_v1 = vadd.f32 %v3949_v36, %v854_v14  ;;  %v2929_v9 = vpop.f32.mrb[42].mxu0 }
 0x141   : > { %v3292_v12 = vpop.eup %3291  ;;  %v1358_v13 = vmul.f32 %v3290_v5, %v4074_v10  ;;  %3311 = vpow2.f32 %v2667_v61  ;;  %v2670_v38 = vmul.f32 -1.442695, %v4149_v2  ;;  %v4159_v16 = vadd.f32 %v2929_v9, %v3949_v36  ;;  %v857_v43 = vpop.f32.mrb[43].mxu0 }
 0x142   : > { %v3294_v8 = vpop.eup %3293  ;;  %v1410_v18 = vpack.c.bf16 %v1360_v59, %v1359_v0  ;;  %v1175_v3 = vadd.f32 1.0, %v3292_v12  ;;  %3313 = vpow2.f32 %v2665_v63  ;;  %v2668_v10 = vmul.f32 -1.442695, %v4154_v1 }
 0x143   : > { %v3296_v7 = vpop.eup %3295  ;;  %v1409_v19 = vpack.c.bf16 %v1358_v13, %v1357_v6  ;;  %v1173_v20 = vadd.f32 1.0, %v3294_v8  ;;  %3315 = vpow2.f32 %v2670_v38  ;;  %v4163_v24 = vadd.f32 %v3949_v36, %v857_v43 }
 0x144   : > { %v3298_v21 = vpop.eup %3297  ;;  %3317 = vrcp.f32 %v1175_v3  ;;  %v1176_v22 = vadd.f32 1.0, %v3296_v7  ;;  %v2671_v29 = vmul.f32 -1.442695, %v4159_v16 }
 0x145   : > { %v3300_v25 = vpop.eup %3299  ;;  %3319 = vrcp.f32 %v1173_v20  ;;  %v1174_v28 = vadd.f32 1.0, %v3298_v21  ;;  %2978 = vmatprep.mubr.msk.bf16.mxu1 %vm563_vm0, %v1409_v19  ;;  %v2669_v52 = vmul.f32 -1.442695, %v4163_v24 }
 0x146   : > { %v3302_v30 = vpop.eup %3301  ;;  %3321 = vrcp.f32 %v1176_v22  ;;  %2979 = vmatmul.mubr.msk.bf16.gmra.mrb[24].mxu1 %vm563_vm0, %v1410_v18  ;;  %v2932_v58 = vpop.f32.mrb[44].mxu0  ;;  %v1363_v41 = vmul.f32 %v3300_v25, %v4086_v50 }
 0x147   : > { %v3304_v31 = vpop.eup %3303  ;;  %3323 = vrcp.f32 %v1174_v28  ;;  %v4170_v33 = vadd.f32 %v2932_v58, %v3949_v36  ;;  %v870_v37 = vpop.f32.mrb[45].mxu0  ;;  %v1361_v35 = vmul.f32 %v3302_v30, %v4089_v23 }
 0x148   : > { %v3306_v27 = vpop.eup %3305  ;;  %v1364_v26 = vmul.f32 %v3304_v31, %v4093_v45  ;;  %3325 = vpow2.f32 %v2668_v10  ;;  %v2933_v34 = vpop.f32.mrb[46].mxu0  ;;  %v4178_v51 = vadd.f32 %v3949_v36, %v870_v37 }
 0x149   : > { %v3308_v44 = vpop.eup %3307  ;;  %v1362_v47 = vmul.f32 %v3306_v27, %v4097_v49  ;;  %3327 = vpow2.f32 %v2671_v29  ;;  %v2674_v48 = vmul.f32 -1.442695, %v4170_v33  ;;  %v873_v53 = vpop.f32.mrb[47].mxu0  ;;  %v4181_v50 = vadd.f32 %v2933_v34, %v3949_v36 }
 0x14a   : > { %v3310_v55 = vpop.eup %3309  ;;  %v1412_v56 = vpack.c.bf16 %v1364_v26, %v1363_v41  ;;  %v1179_v57 = vadd.f32 1.0, %v3308_v44  ;;  %3329 = vpow2.f32 %v2669_v52  ;;  %v4184_v62 = vadd.f32 %v3949_v36, %v873_v53 }
 0x14b   : > { %v3312_v23 = vpop.eup %3311  ;;  %v1411_v45 = vpack.c.bf16 %v1362_v47, %v1361_v35  ;;  %v1177_v60 = vadd.f32 1.0, %v3310_v55  ;;  %3331 = vpow2.f32 %v2674_v48  ;;  %v2672_v11 = vmul.f32 -1.442695, %v4178_v51 }
 0x14c   : > { %v3314_v61 = vpop.eup %3313  ;;  %3333 = vrcp.f32 %v1179_v57  ;;  %v1180_v49 = vadd.f32 1.0, %v3312_v23  ;;  %v2675_v5 = vmul.f32 -1.442695, %v4181_v50  ;;  %v2673_v9 = vmul.f32 -1.442695, %v4184_v62 }
 0x14d   : > { %v3316_v63 = vpop.eup %3315  ;;  %3335 = vrcp.f32 %v1177_v60  ;;  %v1178_v46 = vadd.f32 1.0, %v3314_v61  ;;  %2982 = vmatprep.mubr.msk.bf16.mxu1 %vm563_vm0, %v1411_v45 }
 0x14e   : > { %v3318_v0 = vpop.eup %3317  ;;  %3337 = vrcp.f32 %v1180_v49  ;;  %v1183_v14 = vadd.f32 1.0, %v3316_v63  ;;  %2983 = vmatmul.mubr.msk.bf16.gmra.mrb[28].mxu1 %vm563_vm0, %v1412_v56  ;;  %v2936_v6 = vpop.f32.mrb[48].mxu0 }
 0x14f   : > { %v3320_v59 = vpop.eup %3319  ;;  %3339 = vrcp.f32 %v1178_v46  ;;  %v4192_v12 = vadd.f32 %v2936_v6, %v3949_v36  ;;  %v886_v13 = vpop.f32.mrb[49].mxu0  ;;  %v1367_v43 = vmul.f32 %v3318_v0, %v4106_v40 }
 0x150   : > { %v3322_v38 = vpop.eup %3321  ;;  %3341 = vrcp.f32 %v1183_v14  ;;  %v2937_v8 = vpop.f32.mrb[50].mxu0  ;;  %v4198_v19 = vadd.f32 %v3949_v36, %v886_v13  ;;  %v1365_v22 = vmul.f32 %v3320_v59, %v4111_v4 }
 0x151   : > { %v3324_v18 = vpop.eup %3323  ;;  %v1368_v3 = vmul.f32 %v3322_v38, %v4114_v15  ;;  %3343 = vpow2.f32 %v2672_v11  ;;  %v2678_v7 = vmul.f32 -1.442695, %v4192_v12  ;;  %v889_v20 = vpop.f32.mrb[51].mxu0  ;;  %v4203_v40 = vadd.f32 %v2937_v8, %v3949_v36 }
 0x152   : > { %v3326_v21 = vpop.eup %3325  ;;  %v1366_v10 = vmul.f32 %v3324_v18, %v4118_v17  ;;  %3345 = vpow2.f32 %v2675_v5  ;;  %v4206_v15 = vadd.f32 %v3949_v36, %v889_v20  ;;  %v2676_v17 = vmul.f32 -1.442695, %v4198_v19 }
 0x153   : > { %v3328_v25 = vpop.eup %3327  ;;  %v1414_v28 = vpack.c.bf16 %v1368_v3, %v1367_v43  ;;  %v1181_v29 = vadd.f32 1.0, %v3326_v21  ;;  %3347 = vpow2.f32 %v2673_v9  ;;  %v2679_v41 = vmul.f32 -1.442695, %v4203_v40 }
 0x154   : > { %v3330_v30 = vpop.eup %3329  ;;  %v1413_v52 = vpack.c.bf16 %v1366_v10, %v1365_v22  ;;  %v1184_v58 = vadd.f32 1.0, %v3328_v25  ;;  %3349 = vpow2.f32 %v2678_v7  ;;  %v2677_v34 = vmul.f32 -1.442695, %v4206_v15 }
 0x155   : > { %v3332_v31 = vpop.eup %3331  ;;  %3351 = vrcp.f32 %v1181_v29  ;;  %v1182_v4 = vadd.f32 1.0, %v3330_v30 }
 0x156   : > { %v3334_v37 = vpop.eup %3333  ;;  %3353 = vrcp.f32 %v1184_v58  ;;  %v1187_v27 = vadd.f32 1.0, %v3332_v31  ;;  %2986 = vmatprep.mubr.msk.bf16.mxu1 %vm563_vm0, %v1413_v52  ;;  %v2940_v35 = vpop.f32.mrb[52].mxu0 }
 0x157   : > { %v3336_v26 = vpop.eup %3335  ;;  %3355 = vrcp.f32 %v1182_v4  ;;  %2987 = vmatmul.mubr.msk.bf16.gmra.mrb[32].mxu1 %vm563_vm0, %v1414_v28  ;;  %v4214_v44 = vadd.f32 %v2940_v35, %v3949_v36  ;;  %v902_v47 = vpop.f32.mrb[53].mxu0  ;;  %v1371_v53 = vmul.f32 %v3334_v37, %v4128_v32  ;;  %v3683_v35 = vld [vmem:[%s4750_s2] ss:$0 sm:$0xff] }
 0x158   : > { %v3338_v48 = vpop.eup %3337  ;;  %3357 = vrcp.f32 %v1187_v27  ;;  %v4218_v55 = vadd.f32 %v3949_v36, %v902_v47  ;;  %v2941_v56 = vpop.f32.mrb[54].mxu0  ;;  %v1369_v23 = vmul.f32 %v3336_v26, %v4133_v39 }
 0x159   : > { %v3340_v57 = vpop.eup %3339  ;;  %v1372_v45 = vmul.f32 %v3338_v48, %v4137_v42  ;;  %3359 = vpow2.f32 %v2676_v17  ;;  %v2682_v60 = vmul.f32 -1.442695, %v4214_v44  ;;  %v905_v61 = vpop.f32.mrb[55].mxu0  ;;  %v4226_v46 = vadd.f32 %v2941_v56, %v3949_v36 }
 0x15a   : > { %v3342_v49 = vpop.eup %3341  ;;  %v1370_v63 = vmul.f32 %v3340_v57, %v4140_v54  ;;  %3361 = vpow2.f32 %v2679_v41  ;;  %v2680_v32 = vmul.f32 -1.442695, %v4218_v55  ;;  %v4229_v39 = vadd.f32 %v3949_v36, %v905_v61 }
 0x15b   : > { %v3344_v11 = vpop.eup %3343  ;;  %v1416_v0 = vpack.c.bf16 %v1372_v45, %v1371_v53  ;;  %3363 = vpow2.f32 %v2677_v34  ;;  %v2683_v13 = vmul.f32 -1.442695, %v4226_v46  ;;  %v1375_v25 = vmul.f32 %v3342_v49, %v4149_v2 }
 0x15c   : > { %v3346_v42 = vpop.eup %3345  ;;  %v1415_v14 = vpack.c.bf16 %v1370_v63, %v1369_v23  ;;  %v1185_v5 = vadd.f32 1.0, %v3344_v11  ;;  %3365 = vpow2.f32 %v2682_v60  ;;  %v2681_v18 = vmul.f32 -1.442695, %v4229_v39 }
 0x15d   : > { %v3348_v6 = vpop.eup %3347  ;;  %v1188_v59 = vadd.f32 1.0, %v3346_v42  ;;  %3367 = vpow2.f32 %v2680_v32 }
 0x15e   : > { %v3350_v54 = vpop.eup %3349  ;;  %3369 = vrcp.f32 %v1185_v5  ;;  %v1186_v9 = vadd.f32 1.0, %v3348_v6  ;;  %2990 = vmatprep.mubr.msk.bf16.mxu1 %vm563_vm0, %v1415_v14  ;;  %v2944_v38 = vpop.f32.mrb[56].mxu0 }
 0x15f   : > { %v3352_v43 = vpop.eup %3351  ;;  %3371 = vrcp.f32 %v1188_v59  ;;  %v1191_v8 = vadd.f32 1.0, %v3350_v54  ;;  %2991 = vmatmul.mubr.msk.bf16.gmra.mrb[36].mxu1 %vm563_vm0, %v1416_v0  ;;  %v4236_v3 = vadd.f32 %v2944_v38, %v3949_v36  ;;  %v918_v7 = vpop.f32.mrb[57].mxu0 }
 0x160   : > { %v3354_v20 = vpop.eup %3353  ;;  %3373 = vrcp.f32 %v1186_v9  ;;  %v4239_v21 = vadd.f32 %v3949_v36, %v918_v7  ;;  %v2945_v22 = vpop.f32.mrb[58].mxu0  ;;  %v1373_v58 = vmul.f32 %v3352_v43, %v4154_v1 }
 0x161   : > { %v3356_v10 = vpop.eup %3355  ;;  %v1376_v28 = vmul.f32 %v3354_v20, %v4159_v16  ;;  %3375 = vrcp.f32 %v1191_v8  ;;  %v2686_v29 = vmul.f32 -1.442695, %v4236_v3  ;;  %v921_v30 = vpop.f32.mrb[59].mxu0  ;;  %v4248_v27 = vadd.f32 %v2945_v22, %v3949_v36 }
 0x162   : > { %v3358_v52 = vpop.eup %3357  ;;  %v1374_v31 = vmul.f32 %v3356_v10, %v4163_v24  ;;  %3377 = vpow2.f32 %v2683_v13  ;;  %v2684_v4 = vmul.f32 -1.442695, %v4239_v21  ;;  %v4253_v1 = vadd.f32 %v3683_v35, %v921_v30 }
 0x163   : > { %v3360_v17 = vpop.eup %3359  ;;  %v1418_v37 = vpack.c.bf16 %v1376_v28, %v1375_v25  ;;  %3379 = vpow2.f32 %v2681_v18  ;;  %v2687_v56 = vmul.f32 -1.442695, %v4248_v27  ;;  %v1379_v14 = vmul.f32 %v3358_v52, %v4170_v33 }
 0x164   : > { %v3362_v2 = vpop.eup %3361  ;;  %v1417_v16 = vpack.c.bf16 %v1374_v31, %v1373_v58  ;;  %v1189_v41 = vadd.f32 1.0, %v3360_v17  ;;  %3381 = vpow2.f32 %v2686_v29  ;;  %v2685_v61 = vmul.f32 -1.442695, %v4253_v1 }
 0x165   : > { %v3364_v24 = vpop.eup %3363  ;;  %v1192_v26 = vadd.f32 1.0, %v3362_v2  ;;  %3383 = vpow2.f32 %v2684_v4 }
 0x166   : > { %v3366_v34 = vpop.eup %3365  ;;  %3385 = vrcp.f32 %v1189_v41  ;;  %v1190_v47 = vadd.f32 1.0, %v3364_v24  ;;  %2994 = vmatprep.mubr.msk.bf16.mxu1 %vm563_vm0, %v1417_v16  ;;  %v2948_v36 = vpop.f32.mrb[60].mxu0 }
 0x167   : > { %v3368_v48 = vpop.eup %3367  ;;  %3387 = vrcp.f32 %v1192_v26  ;;  %v1195_v53 = vadd.f32 1.0, %v3366_v34  ;;  %2995 = vmatmul.mubr.msk.bf16.gmra.mrb[40].mxu1 %vm563_vm0, %v1418_v37  ;;  %v4258_v57 = vadd.f32 %v3683_v35, %v2948_v36  ;;  %v934_v23 = vpop.f32.mrb[61].mxu0 }
 0x168   : > { %v3370_v45 = vpop.eup %3369  ;;  %3389 = vrcp.f32 %v1190_v47  ;;  %v1193_v60 = vadd.f32 1.0, %v3368_v48  ;;  %v4261_v49 = vadd.f32 %v3683_v35, %v934_v23  ;;  %v2949_v63 = vpop.f32.mrb[62].mxu0 }
 0x169   : > { %v3372_v32 = vpop.eup %3371  ;;  %3391 = vrcp.f32 %v1195_v53  ;;  %v2690_v11 = vmul.f32 -1.442695, %v4258_v57  ;;  %v937_v0 = vpop.f32.mrb[63].mxu0  ;;  %v1377_v54 = vmul.f32 %v3370_v45, %v4178_v51  ;;  %v4269_v13 = vadd.f32 %v3683_v35, %v2949_v63 }
 0x16a   : > { %v3374_v42 = vpop.eup %3373  ;;  %v1380_v5 = vmul.f32 %v3372_v32, %v4181_v50  ;;  %3393 = vrcp.f32 %v1193_v60  ;;  %v2688_v6 = vmul.f32 -1.442695, %v4261_v49  ;;  %v4271_v8 = vadd.f32 %v3683_v35, %v937_v0 }
 0x16b   : > { %v3376_v59 = vpop.eup %3375  ;;  %v1378_v9 = vmul.f32 %v3374_v42, %v4184_v62  ;;  %3395 = vpow2.f32 %v2687_v56  ;;  %v2691_v51 = vmul.f32 -1.442695, %v4269_v13 }
 0x16c   : > { %v3378_v38 = vpop.eup %3377  ;;  %v1420_v43 = vpack.c.bf16 %v1380_v5, %v1379_v14  ;;  %3397 = vpow2.f32 %v2685_v61  ;;  %v2689_v10 = vmul.f32 -1.442695, %v4271_v8  ;;  %v1383_v29 = vmul.f32 %v3376_v59, %v4192_v12 }
 0x16d   : > { %v3380_v18 = vpop.eup %3379  ;;  %v1419_v33 = vpack.c.bf16 %v1378_v9, %v1377_v54  ;;  %v1196_v7 = vadd.f32 1.0, %v3378_v38  ;;  %3399 = vpow2.f32 %v2690_v11 }
 0x16e   : > { %v3382_v50 = vpop.eup %3381  ;;  %v1194_v20 = vadd.f32 1.0, %v3380_v18  ;;  %3401 = vpow2.f32 %v2688_v6 }
 0x16f   : > { %v3384_v22 = vpop.eup %3383  ;;  %3403 = vrcp.f32 %v1196_v7  ;;  %2998 = vmatprep.mubr.msk.bf16.mxu1 %vm563_vm0, %v1419_v33  ;;  %v1199_v52 = vadd.f32 1.0, %v3382_v50  ;;  %v2371_v33 = vld [vmem:[%s4753_s5] sm:$0xff]  ;;  %v3765_v7 = vmov 0.0|0.0  }
 0x170   : > { %v3386_v62 = vpop.eup %3385  ;;  %3405 = vrcp.f32 %v1194_v20  ;;  %2999 = vmatmul.mubr.msk.bf16.gmra.mrb[44].mxu1 %vm563_vm0, %v1420_v43  ;;  %v1197_v17 = vadd.f32 1.0, %v3384_v22  ;;  %3053 = vmatprep.subr.bf16.mxu0 %v3765_v7  ;;  %v2375_v20 = vld [vmem:[%s4753_s5 + $0x20] sm:$0xff]  ;;  %v2376_v22 = vld [vmem:[%s4753_s5 + $0x28] sm:$0xff] }
 0x171   : > { %v3388_v25 = vpop.eup %3387  ;;  %v1381_v31 = vmul.f32 %v3386_v62, %v4198_v19  ;;  %3407 = vpow2.f32 %v2691_v51  ;;  %v3060_v51 = vpack.c.bf16 %v2376_v22, %v2375_v20  ;;  %v4326_v62 = vld [vmem:[%s4752_s4] ss:$0 sm:$0xff] }
 0x172   : > { %v3390_v28 = vpop.eup %3389  ;;  %v1384_v30 = vmul.f32 %v3388_v25, %v4203_v40  ;;  %3409 = vpow2.f32 %v2689_v10  ;;  %v2379_v22 = vld [vmem:[%s4753_s5 + $0x40] sm:$0xff] }
 0x173   : > { %v3392_v58 = vpop.eup %3391  ;;  %v1382_v4 = vmul.f32 %v3390_v28, %v4206_v15  ;;  %3411 = vrcp.f32 %v1199_v52 }
 0x174   : > { %v3394_v37 = vpop.eup %3393  ;;  %v1422_v2 = vpack.c.bf16 %v1384_v30, %v1383_v29  ;;  %3413 = vrcp.f32 %v1197_v17  ;;  %v1387_v34 = vmul.f32 %v3392_v58, %v4214_v44 }
 0x175   : > { %v3396_v16 = vpop.eup %3395  ;;  %v1421_v41 = vpack.c.bf16 %v1382_v4, %v1381_v31  ;;  %v1385_v48 = vmul.f32 %v3394_v37, %v4218_v55 }
 0x176   : > { %v3398_v35 = vpop.eup %3397  ;;  %v1200_v24 = vadd.f32 1.0, %v3396_v16 }
 0x177   : > { %v3400_v26 = vpop.eup %3399  ;;  %v1198_v12 = vadd.f32 1.0, %v3398_v35  ;;  %3002 = vmatprep.mubr.msk.bf16.mxu1 %vm563_vm0, %v1421_v41 }
 0x178   : > { %v3402_v40 = vpop.eup %3401  ;;  %3415 = vrcp.f32 %v1200_v24  ;;  %3003 = vmatmul.mubr.msk.bf16.gmra.mrb[48].mxu1 %vm563_vm0, %v1422_v2  ;;  %v1203_v36 = vadd.f32 1.0, %v3400_v26 }
 0x179   : > { %v3404_v19 = vpop.eup %3403  ;;  %3417 = vrcp.f32 %v1198_v12  ;;  %v1201_v56 = vadd.f32 1.0, %v3402_v40  ;;  %v2377_v12 = vld [vmem:[%s4753_s5 + $0x30] sm:$0xff]  ;;  %v2378_v40 = vld [vmem:[%s4753_s5 + $0x38] sm:$0xff] }
 0x17a   : > { %v3406_v15 = vpop.eup %3405  ;;  %v1388_v47 = vmul.f32 %v3404_v19, %v4226_v46  ;;  %3419 = vrcp.f32 %v1203_v36 }
 0x17b   : > { %v1386_v53 = vmul.f32 %v3406_v15, %v4229_v39  ;;  %v3408_v45 = vpop.eup %3407  ;;  %3421 = vrcp.f32 %v1201_v56 }
 0x17c   : > { %v1424_v23 = vpack.c.bf16 %v1388_v47, %v1387_v34  ;;  %v3410_v61 = vpop.eup %3409  ;;  %v1204_v63 = vadd.f32 1.0, %v3408_v45  ;;  %v3063_v47 = vpack.c.bf16 %v2378_v40, %v2377_v12 }
 0x17d   : > { %v1423_v60 = vpack.c.bf16 %v1386_v53, %v1385_v48  ;;  %v1202_v32 = vadd.f32 1.0, %v3410_v61  ;;  %v3412_v11 = vpop.eup %3411 }
 0x17e   : > { %3423 = vrcp.f32 %v1204_v63  ;;  %v3414_v44 = vpop.eup %3413  ;;  %v1391_v39 = vmul.f32 %v3412_v11, %v4236_v3 }
 0x17f   : > { %3006 = vmatprep.mubr.msk.bf16.mxu1 %vm563_vm0, %v1423_v60  ;;  %3425 = vrcp.f32 %v1202_v32  ;;  %v1389_v42 = vmul.f32 %v3414_v44, %v4239_v21 }
 0x180   : > { %3007 = vmatmul.mubr.msk.bf16.gmra.mrb[52].mxu1 %vm563_vm0, %v1424_v23 }
 0x182   : > { %v3416_v55 = vpop.eup %3415 }
 0x183   : > { %v3418_v46 = vpop.eup %3417  ;;  %v1392_v0 = vmul.f32 %v3416_v55, %v4248_v27 }
 0x184   : > { %v1390_v14 = vmul.f32 %v3418_v46, %v4253_v1  ;;  %v3420_v59 = vpop.eup %3419 }
 0x185   : > { %v1426_v5 = vpack.c.bf16 %v1392_v0, %v1391_v39  ;;  %v3422_v54 = vpop.eup %3421  ;;  %v1395_v43 = vmul.f32 %v3420_v59, %v4258_v57  ;;  %v2372_v57 = vld [vmem:[%s4753_s5 + $0x8] sm:$0xff] }
 0x186   : > { %v1425_v6 = vpack.c.bf16 %v1390_v14, %v1389_v42  ;;  %v1393_v27 = vmul.f32 %v3422_v54, %v4261_v49  ;;  %v3054_v49 = vpack.c.bf16 %v2372_v57, %v2371_v33 }
 0x188   : > { %3010 = vmatprep.mubr.msk.bf16.mxu1 %vm563_vm0, %v1425_v6  ;;  %v3424_v9 = vpop.eup %3423  ;;  %3055 = vmatpush3.bf16.msra.mxu0 %v3054_v49 }
 0x189   : > { %3011 = vmatmul.mubr.msk.bf16.gmra.mrb[56].mxu1 %vm563_vm0, %v1426_v5  ;;  %v3426_v38 = vpop.eup %3425  ;;  %v1396_v3 = vmul.f32 %v3424_v9, %v4269_v13  ;;  %3056 = vmatprep.subr.bf16.mxu0 %v3765_v7  ;;  %v2373_v13 = vld [vmem:[%s4753_s5 + $0x10] sm:$0xff] }
 0x18a   : > { %v1394_v21 = vmul.f32 %v3426_v38, %v4271_v8  ;;  %v2374_v8 = vld [vmem:[%s4753_s5 + $0x18] sm:$0xff] }
 0x18b   : > { %v1428_v18 = vpack.c.bf16 %v1396_v3, %v1395_v43  ;;  %v3057_v50 = vpack.c.bf16 %v2374_v8, %v2373_v13 }
 0x18c   : > { %v1427_v1 = vpack.c.bf16 %v1394_v21, %v1393_v27 }
 0x18d   : > { %3058 = vmatpush3.bf16.msra.mxu0 %v3057_v50 }
 0x18e   : > { %3014 = vmatprep.mubr.msk.bf16.mxu1 %vm563_vm0, %v1427_v1  ;;  %3059 = vmatprep.subr.bf16.mxu0 %v3765_v7 }
 0x191   : > { %3015 = vmatmul.mubr.msk.bf16.gmra.mrb[60].mxu1 %vm563_vm0, %v1428_v18  ;;  %3061 = vmatpush3.bf16.msra.mxu0 %v3060_v51  ;;  %v2380_v51 = vld [vmem:[%s4753_s5 + $0x48] sm:$0xff] }
 0x192   : > { %3062 = vmatprep.subr.bf16.mxu0 %v3765_v7 }
 0x195   : > { %3064 = vmatpush3.bf16.msra.mxu0 %v3063_v47 }
 0x196   : > { %3065 = vmatprep.subr.bf16.mxu0 %v3765_v7 }
 0x1e6   : > { %v2956_v10 = vpop.f32.mrb[0].mxu1 }
 0x1e7   : > { %v4329_v25 = vadd.f32 %v2956_v10, %v4326_v62  ;;  %v1582_v28 = vpop.f32.mrb[1].mxu1 }
 0x1e8   : > { %v4332_v29 = vadd.f32 %v4326_v62, %v1582_v28  ;;  %v2957_v30 = vpop.f32.mrb[2].mxu1 }
 0x1e9   : > { %v2729_v52 = vmul.f32 -1.442695, %v4329_v25  ;;  %v4336_v58 = vadd.f32 %v2957_v30, %v4326_v62  ;;  %v1585_v31 = vpop.f32.mrb[3].mxu1 }
 0x1ea   : > { %v2727_v4 = vmul.f32 -1.442695, %v4332_v29  ;;  %v4340_v17 = vadd.f32 %v4326_v62, %v1585_v31  ;;  %v3066_v31 = vpack.c.bf16 %v2380_v51, %v2379_v22 }
 0x1eb   : > { %3427 = vpow2.f32 %v2729_v52  ;;  %v2730_v37 = vmul.f32 -1.442695, %v4336_v58 }
 0x1ec   : > { %3429 = vpow2.f32 %v2727_v4  ;;  %v2728_v2 = vmul.f32 -1.442695, %v4340_v17  ;;  %3067 = vmatpush3.bf16.msra.mxu0 %v3066_v31 }
 0x1ed   : > { %3431 = vpow2.f32 %v2730_v37  ;;  %3068 = vmatprep.subr.bf16.mxu0 %v3765_v7 }
 0x1ee   : > { %3433 = vpow2.f32 %v2728_v2  ;;  %v2960_v16 = vpop.f32.mrb[4].mxu1 }
 0x1ef   : > { %v4345_v41 = vadd.f32 %v2960_v16, %v4326_v62  ;;  %v1598_v35 = vpop.f32.mrb[5].mxu1 }
 0x1f0   : > { %v4348_v24 = vadd.f32 %v4326_v62, %v1598_v35  ;;  %v2961_v26 = vpop.f32.mrb[6].mxu1 }
 0x1f1   : > { %v2733_v19 = vmul.f32 -1.442695, %v4345_v41  ;;  %v4358_v15 = vadd.f32 %v2961_v26, %v4326_v62  ;;  %v1601_v34 = vpop.f32.mrb[7].mxu1 }
 0x1f2   : > { %v2731_v36 = vmul.f32 -1.442695, %v4348_v24  ;;  %v4362_v48 = vadd.f32 %v4326_v62, %v1601_v34 }
 0x1f3   : > { %3435 = vpow2.f32 %v2733_v19  ;;  %v2734_v53 = vmul.f32 -1.442695, %v4358_v15 }
 0x1f4   : > { %3437 = vpow2.f32 %v2731_v36  ;;  %v2732_v56 = vmul.f32 -1.442695, %v4362_v48 }
 0x1f5   : > { %v3428_v23 = vpop.eup %3427  ;;  %3439 = vpow2.f32 %v2734_v53 }
 0x1f6   : > { %v3430_v45 = vpop.eup %3429  ;;  %v2031_v60 = vadd.f32 1.0, %v3428_v23  ;;  %3441 = vpow2.f32 %v2732_v56 }
 0x1f7   : > { %v3432_v61 = vpop.eup %3431  ;;  %v2029_v63 = vadd.f32 1.0, %v3430_v45  ;;  %v2964_v32 = vpop.f32.mrb[8].mxu1 }
 0x1f8   : > { %v3434_v11 = vpop.eup %3433  ;;  %3443 = vrcp.f32 %v2031_v60  ;;  %v2032_v44 = vadd.f32 1.0, %v3432_v61  ;;  %v4368_v55 = vadd.f32 %v2964_v32, %v4326_v62  ;;  %v1614_v46 = vpop.f32.mrb[9].mxu1 }
 0x1f9   : > { %3445 = vrcp.f32 %v2029_v63  ;;  %v2030_v39 = vadd.f32 1.0, %v3434_v11  ;;  %v4371_v0 = vadd.f32 %v4326_v62, %v1614_v46  ;;  %v2965_v42 = vpop.f32.mrb[10].mxu1 }
 0x1fa   : > { %3447 = vrcp.f32 %v2032_v44  ;;  %v2737_v14 = vmul.f32 -1.442695, %v4368_v55  ;;  %v4375_v5 = vadd.f32 %v2965_v42, %v4326_v62  ;;  %v1617_v6 = vpop.f32.mrb[11].mxu1 }
 0x1fb   : > { %3449 = vrcp.f32 %v2030_v39  ;;  %v2735_v59 = vmul.f32 -1.442695, %v4371_v0  ;;  %v4379_v54 = vadd.f32 %v4326_v62, %v1617_v6 }
 0x1fc   : > { %3451 = vpow2.f32 %v2737_v14  ;;  %v2738_v9 = vmul.f32 -1.442695, %v4375_v5 }
 0x1fd   : > { %v3436_v38 = vpop.eup %3435  ;;  %3453 = vpow2.f32 %v2735_v59  ;;  %v2736_v43 = vmul.f32 -1.442695, %v4379_v54 }
 0x1fe   : > { %v3438_v3 = vpop.eup %3437  ;;  %v2035_v27 = vadd.f32 1.0, %v3436_v38  ;;  %3455 = vpow2.f32 %v2738_v9 }
 0x1ff   : > { %v3440_v21 = vpop.eup %3439  ;;  %v2033_v18 = vadd.f32 1.0, %v3438_v3  ;;  %3457 = vpow2.f32 %v2736_v43  ;;  %v2968_v1 = vpop.f32.mrb[12].mxu1 }
 0x200   : > { %v3442_v33 = vpop.eup %3441  ;;  %3459 = vrcp.f32 %v2035_v27  ;;  %v2036_v57 = vadd.f32 1.0, %v3440_v21  ;;  %v4384_v49 = vadd.f32 %v2968_v1, %v4326_v62  ;;  %v1630_v13 = vpop.f32.mrb[13].mxu1 }
 0x201   : > { %3461 = vrcp.f32 %v2033_v18  ;;  %v2034_v8 = vadd.f32 1.0, %v3442_v33  ;;  %v4387_v50 = vadd.f32 %v4326_v62, %v1630_v13  ;;  %v2969_v20 = vpop.f32.mrb[14].mxu1 }
 0x202   : > { %v3444_v10 = vpop.eup %3443  ;;  %3463 = vrcp.f32 %v2036_v57  ;;  %v2741_v28 = vmul.f32 -1.442695, %v4384_v49  ;;  %v4397_v30 = vadd.f32 %v2969_v20, %v4326_v62  ;;  %v1633_v52 = vpop.f32.mrb[15].mxu1 }
 0x203   : > { %v3446_v4 = vpop.eup %3445  ;;  %3465 = vrcp.f32 %v2034_v8  ;;  %v2739_v37 = vmul.f32 -1.442695, %v4387_v50  ;;  %v4401_v2 = vadd.f32 %v4326_v62, %v1633_v52  ;;  %v2223_v56 = vmul.f32 %v3444_v10, %v4329_v25 }
 0x204   : > { %v3448_v16 = vpop.eup %3447  ;;  %3467 = vpow2.f32 %v2741_v28  ;;  %v2742_v35 = vmul.f32 -1.442695, %v4397_v30  ;;  %v2221_v19 = vmul.f32 %v3446_v4, %v4332_v29 }
 0x205   : > { %v3450_v26 = vpop.eup %3449  ;;  %3469 = vpow2.f32 %v2739_v37  ;;  %v2740_v12 = vmul.f32 -1.442695, %v4401_v2  ;;  %v2224_v63 = vmul.f32 %v3448_v16, %v4336_v58 }
 0x206   : > { %v3452_v40 = vpop.eup %3451  ;;  %v2222_v34 = vmul.f32 %v3450_v26, %v4340_v17  ;;  %3471 = vpow2.f32 %v2742_v35 }
 0x207   : > { %v3454_v47 = vpop.eup %3453  ;;  %v2039_v36 = vadd.f32 1.0, %v3452_v40  ;;  %3473 = vpow2.f32 %v2740_v12 }
 0x208   : > { %v3456_v53 = vpop.eup %3455  ;;  %v2286_v23 = vadd.f32 %v2222_v34, %v2221_v19  ;;  %v2037_v45 = vadd.f32 1.0, %v3454_v47  ;;  %v2972_v60 = vpop.f32.mrb[16].mxu1 }
 0x209   : > { %v3458_v61 = vpop.eup %3457  ;;  %3475 = vrcp.f32 %v2039_v36  ;;  %v2040_v32 = vadd.f32 1.0, %v3456_v53  ;;  %v4411_v11 = vadd.f32 %v2972_v60, %v4326_v62  ;;  %v1646_v29 = vpop.f32.mrb[17].mxu1  ;;  %v3766_v36 = vmov 0.0  }
 0x20a   : > { %v3460_v17 = vpop.eup %3459  ;;  %v2287_v44 = vadd.f32 %v2286_v23, %v2223_v56  ;;  %3477 = vrcp.f32 %v2037_v45  ;;  %v2038_v46 = vadd.f32 1.0, %v3458_v61  ;;  %v4414_v39 = vadd.f32 %v4326_v62, %v1646_v29  ;;  %v2973_v25 = vpop.f32.mrb[18].mxu1  ;;  %315 = vst [vmem:[#allocation2] sm:$0x3] %v3766_v36  ;;  %3050 = vmatprep.mubr.msk.f32.mxu0 %vm3767_vm1, %v3766_v36 }
 0x20b   : > { %v3462_v42 = vpop.eup %3461  ;;  %3479 = vrcp.f32 %v2040_v32  ;;  %v2745_v14 = vmul.f32 -1.442695, %v4411_v11  ;;  %v4418_v58 = vadd.f32 %v2973_v25, %v4326_v62  ;;  %v1649_v6 = vpop.f32.mrb[19].mxu1  ;;  %v2227_v8 = vmul.f32 %v3460_v17, %v4345_v41  ;;  %v2381_v17 = vld [vmem:[%s4753_s5 + $0x50] sm:$0xff] }
 0x20c   : > { %v3464_v59 = vpop.eup %3463  ;;  %v2225_v9 = vmul.f32 %v3462_v42, %v4348_v24  ;;  %v2288_v38 = vadd.f32 %v2287_v44, %v2224_v63  ;;  %3481 = vrcp.f32 %v2038_v46  ;;  %v2743_v43 = vmul.f32 -1.442695, %v4414_v39  ;;  %v2383_v42 = vld [vmem:[%s4753_s5 + $0x60] sm:$0xff] }
 0x20d   : > { %v3466_v3 = vpop.eup %3465  ;;  %3483 = vpow2.f32 %v2745_v14  ;;  %v2746_v27 = vmul.f32 -1.442695, %v4418_v58  ;;  %v4424_v21 = vadd.f32 %v4326_v62, %v1649_v6  ;;  %v2228_v20 = vmul.f32 %v3464_v59, %v4358_v15 }
 0x20e   : > { %v3468_v18 = vpop.eup %3467  ;;  %v2289_v1 = vadd.f32 %v2288_v38, %v2225_v9  ;;  %v2226_v33 = vmul.f32 %v3466_v3, %v4362_v48  ;;  %3485 = vpow2.f32 %v2743_v43 }
 0x20f   : > { %v3470_v57 = vpop.eup %3469  ;;  %v2043_v13 = vadd.f32 1.0, %v3468_v18  ;;  %3487 = vpow2.f32 %v2746_v27  ;;  %v2744_v31 = vmul.f32 -1.442695, %v4424_v21 }
 0x210   : > { %v3472_v24 = vpop.eup %3471  ;;  %v2290_v22 = vadd.f32 %v2289_v1, %v2226_v33  ;;  %v2041_v51 = vadd.f32 1.0, %v3470_v57  ;;  %v2976_v10 = vpop.f32.mrb[20].mxu1 }
 0x211   : > { %v3474_v28 = vpop.eup %3473  ;;  %3489 = vrcp.f32 %v2043_v13  ;;  %v2044_v52 = vadd.f32 1.0, %v3472_v24  ;;  %v4431_v4 = vadd.f32 %v2976_v10, %v4326_v62  ;;  %v1662_v48 = vpop.f32.mrb[21].mxu1  ;;  %v2385_v24 = vld [vmem:[%s4753_s5 + $0x70] sm:$0xff] }
 0x212   : > { %v2291_v37 = vadd.f32 %v2290_v22, %v2227_v8  ;;  %3491 = vrcp.f32 %v2041_v51  ;;  %v2042_v16 = vadd.f32 1.0, %v3474_v28  ;;  %v4434_v35 = vadd.f32 %v4326_v62, %v1662_v48  ;;  %v2977_v41 = vpop.f32.mrb[22].mxu1  ;;  %v2386_v8 = vld [vmem:[%s4753_s5 + $0x78] sm:$0xff] }
 0x213   : > { %v3476_v15 = vpop.eup %3475  ;;  %3493 = vrcp.f32 %v2044_v52  ;;  %v2749_v26 = vmul.f32 -1.442695, %v4431_v4  ;;  %v4438_v12 = vadd.f32 %v2977_v41, %v4326_v62  ;;  %v1665_v40 = vpop.f32.mrb[23].mxu1  ;;  %v3075_v41 = vpack.c.bf16 %v2386_v8, %v2385_v24 }
 0x214   : > { %v3478_v19 = vpop.eup %3477  ;;  %v2292_v34 = vadd.f32 %v2291_v37, %v2228_v20  ;;  %3495 = vrcp.f32 %v2042_v16  ;;  %v2747_v47 = vmul.f32 -1.442695, %v4434_v35  ;;  %v4445_v45 = vadd.f32 %v4326_v62, %v1665_v40 }
 0x215   : > { %v3480_v53 = vpop.eup %3479  ;;  %v2229_v56 = vmul.f32 %v3478_v19, %v4371_v0  ;;  %3497 = vpow2.f32 %v2744_v31  ;;  %v2750_v23 = vmul.f32 -1.442695, %v4438_v12  ;;  %v2382_v0 = vld [vmem:[%s4753_s5 + $0x58] sm:$0xff]  ;;  %v2231_v6 = vmul.f32 %v3476_v15, %v4368_v55 }
 0x216   : > { %v3482_v60 = vpop.eup %3481  ;;  %3499 = vpow2.f32 %v2749_v26  ;;  %v2748_v29 = vmul.f32 -1.442695, %v4445_v45  ;;  %v3069_v25 = vpack.c.bf16 %v2382_v0, %v2381_v17  ;;  %v2232_v33 = vmul.f32 %v3480_v53, %v4375_v5 }
 0x217   : > { %v3484_v61 = vpop.eup %3483  ;;  %v2293_v63 = vadd.f32 %v2292_v34, %v2229_v56  ;;  %v2230_v32 = vmul.f32 %v3482_v60, %v4379_v54  ;;  %3501 = vpow2.f32 %v2747_v47  ;;  %v2384_v54 = vld [vmem:[%s4753_s5 + $0x68] sm:$0xff] }
 0x218   : > { %v3486_v44 = vpop.eup %3485  ;;  %v2047_v46 = vadd.f32 1.0, %v3484_v61  ;;  %3503 = vpow2.f32 %v2750_v23  ;;  %3070 = vmatpush3.bf16.msra.mxu0 %v3069_v25  ;;  %v3072_v18 = vpack.c.bf16 %v2384_v54, %v2383_v42 }
 0x219   : > { %v3488_v14 = vpop.eup %3487  ;;  %v2294_v59 = vadd.f32 %v2293_v63, %v2230_v32  ;;  %v2045_v9 = vadd.f32 1.0, %v3486_v44  ;;  %3505 = vpow2.f32 %v2748_v29  ;;  %v2980_v38 = vpop.f32.mrb[24].mxu1  ;;  %3071 = vmatprep.subr.bf16.mxu0 %v3765_v7 }
 0x21a   : > { %3507 = vrcp.f32 %v2047_v46  ;;  %v2048_v43 = vadd.f32 1.0, %v3488_v14  ;;  %v4463_v3 = vadd.f32 %v2980_v38, %v4326_v62  ;;  %v1678_v27 = vpop.f32.mrb[25].mxu1 }
 0x21b   : > { %v3490_v1 = vpop.eup %3489  ;;  %v2295_v57 = vadd.f32 %v2294_v59, %v2231_v6  ;;  %3509 = vrcp.f32 %v2045_v9  ;;  %v4467_v13 = vadd.f32 %v4326_v62, %v1678_v27  ;;  %v2981_v55 = vpop.f32.mrb[26].mxu1 }
 0x21c   : > { %v3492_v20 = vpop.eup %3491  ;;  %3511 = vrcp.f32 %v2048_v43  ;;  %v2753_v5 = vmul.f32 -1.442695, %v4463_v3  ;;  %v4478_v22 = vadd.f32 %v2981_v55, %v4326_v62  ;;  %v1681_v51 = vpop.f32.mrb[27].mxu1  ;;  %3073 = vmatpush3.bf16.msra.mxu0 %v3072_v18  ;;  %v2235_v53 = vmul.f32 %v3490_v1, %v4384_v49 }
 0x21d   : > { %v3494_v10 = vpop.eup %3493  ;;  %v2233_v28 = vmul.f32 %v3492_v20, %v4387_v50  ;;  %v2296_v52 = vadd.f32 %v2295_v57, %v2232_v33  ;;  %v2751_v31 = vmul.f32 -1.442695, %v4467_v13  ;;  %v4483_v48 = vadd.f32 %v4326_v62, %v1681_v51  ;;  %3074 = vmatprep.subr.bf16.mxu0 %v3765_v7 }
 0x21e   : > { %v3496_v37 = vpop.eup %3495  ;;  %3513 = vpow2.f32 %v2753_v5  ;;  %v2754_v16 = vmul.f32 -1.442695, %v4478_v22 }
 0x21f   : > { %v3498_v15 = vpop.eup %3497  ;;  %v2297_v26 = vadd.f32 %v2296_v52, %v2233_v28  ;;  %v2234_v40 = vmul.f32 %v3496_v37, %v4401_v2  ;;  %3515 = vpow2.f32 %v2751_v31  ;;  %v2752_v19 = vmul.f32 -1.442695, %v4483_v48 }
 0x220   : > { %v3500_v50 = vpop.eup %3499  ;;  %v2046_v34 = vadd.f32 1.0, %v3498_v15  ;;  %3517 = vpow2.f32 %v2754_v16  ;;  %v2236_v2 = vmul.f32 %v3494_v10, %v4397_v30  ;;  %3076 = vmatpush3.bf16.msra.mxu0 %v3075_v41 }
 0x221   : > { %v3502_v47 = vpop.eup %3501  ;;  %v2298_v56 = vadd.f32 %v2297_v26, %v2234_v40  ;;  %v2051_v23 = vadd.f32 1.0, %v3500_v50  ;;  %3519 = vpow2.f32 %v2752_v19  ;;  %v2984_v60 = vpop.f32.mrb[28].mxu1 }
 0x222   : > { %v3504_v61 = vpop.eup %3503  ;;  %3521 = vrcp.f32 %v2046_v34  ;;  %v2049_v63 = vadd.f32 1.0, %v3502_v47  ;;  %v4493_v7 = vadd.f32 %v2984_v60, %v4326_v62  ;;  %v1694_v32 = vpop.f32.mrb[29].mxu1 }
 0x223   : > { %v3506_v36 = vpop.eup %3505  ;;  %v2299_v29 = vadd.f32 %v2298_v56, %v2235_v53  ;;  %3523 = vrcp.f32 %v2051_v23  ;;  %v2052_v17 = vadd.f32 1.0, %v3504_v61  ;;  %v4496_v49 = vadd.f32 %v4326_v62, %v1694_v32  ;;  %v2985_v0 = vpop.f32.mrb[30].mxu1 }
 0x224   : > { %v3508_v44 = vpop.eup %3507  ;;  %3525 = vrcp.f32 %v2049_v63  ;;  %v2050_v46 = vadd.f32 1.0, %v3506_v36  ;;  %v2757_v30 = vmul.f32 -1.442695, %v4493_v7  ;;  %v4500_v25 = vadd.f32 %v2985_v0, %v4326_v62  ;;  %v1697_v42 = vpop.f32.mrb[31].mxu1 }
 0x225   : > { %v3510_v54 = vpop.eup %3509  ;;  %v2300_v14 = vadd.f32 %v2299_v29, %v2236_v2  ;;  %3527 = vrcp.f32 %v2052_v17  ;;  %v2755_v6 = vmul.f32 -1.442695, %v4496_v49  ;;  %v4506_v43 = vadd.f32 %v4326_v62, %v1697_v42 }
 0x226   : > { %v3512_v59 = vpop.eup %3511  ;;  %v2237_v9 = vmul.f32 %v3510_v54, %v4414_v39  ;;  %3529 = vrcp.f32 %v2050_v46  ;;  %v2758_v38 = vmul.f32 -1.442695, %v4500_v25  ;;  %v2239_v47 = vmul.f32 %v3508_v44, %v4411_v11 }
 0x227   : > { %3531 = vpow2.f32 %v2757_v30  ;;  %v2756_v1 = vmul.f32 -1.442695, %v4506_v43  ;;  %v2240_v61 = vmul.f32 %v3512_v59, %v4418_v58 }
 0x228   : > { %v3514_v27 = vpop.eup %3513  ;;  %v2301_v18 = vadd.f32 %v2300_v14, %v2237_v9  ;;  %3533 = vpow2.f32 %v2755_v6 }
 0x229   : > { %v3516_v33 = vpop.eup %3515  ;;  %v2055_v57 = vadd.f32 1.0, %v3514_v27  ;;  %3535 = vpow2.f32 %v2758_v38 }
 0x22a   : > { %v3518_v55 = vpop.eup %3517  ;;  %v2053_v24 = vadd.f32 1.0, %v3516_v33  ;;  %3537 = vpow2.f32 %v2756_v1  ;;  %v2988_v8 = vpop.f32.mrb[32].mxu1 }
 0x22b   : > { %v3520_v39 = vpop.eup %3519  ;;  %3539 = vrcp.f32 %v2055_v57  ;;  %v2056_v20 = vadd.f32 1.0, %v3518_v55  ;;  %v4510_v5 = vadd.f32 %v2988_v8, %v4326_v62  ;;  %v1710_v51 = vpop.f32.mrb[33].mxu1 }
 0x22c   : > { %v3522_v10 = vpop.eup %3521  ;;  %3541 = vrcp.f32 %v2053_v24  ;;  %v2054_v28 = vadd.f32 1.0, %v3520_v39  ;;  %v4513_v52 = vadd.f32 %v4326_v62, %v1710_v51  ;;  %v2989_v31 = vpop.f32.mrb[34].mxu1 }
 0x22d   : > { %v3524_v37 = vpop.eup %3523  ;;  %v2238_v16 = vmul.f32 %v3522_v10, %v4424_v21  ;;  %3543 = vrcp.f32 %v2056_v20  ;;  %v2761_v41 = vmul.f32 -1.442695, %v4510_v5  ;;  %v4518_v15 = vadd.f32 %v2989_v31, %v4326_v62  ;;  %v1713_v26 = vpop.f32.mrb[35].mxu1 }
 0x22e   : > { %v3526_v40 = vpop.eup %3525  ;;  %3545 = vrcp.f32 %v2054_v28  ;;  %v2759_v19 = vmul.f32 -1.442695, %v4513_v52  ;;  %v4522_v50 = vadd.f32 %v4326_v62, %v1713_v26  ;;  %v2243_v33 = vmul.f32 %v3524_v37, %v4431_v4 }
 0x22f   : > { %v3528_v34 = vpop.eup %3527  ;;  %v2302_v53 = vadd.f32 %v2301_v18, %v2238_v16  ;;  %3547 = vpow2.f32 %v2761_v41  ;;  %v2762_v21 = vmul.f32 -1.442695, %v4518_v15  ;;  %v2241_v63 = vmul.f32 %v3526_v40, %v4434_v35 }
 0x230   : > { %v3530_v56 = vpop.eup %3529  ;;  %3549 = vpow2.f32 %v2759_v19  ;;  %v2760_v23 = vmul.f32 -1.442695, %v4522_v50  ;;  %v2244_v8 = vmul.f32 %v3528_v34, %v4438_v12 }
 0x231   : > { %v3532_v60 = vpop.eup %3531  ;;  %v2303_v2 = vadd.f32 %v2302_v53, %v2239_v47  ;;  %3551 = vpow2.f32 %v2762_v21  ;;  %v2242_v0 = vmul.f32 %v3530_v56, %v4445_v45 }
 0x232   : > { %v3534_v32 = vpop.eup %3533  ;;  %v2059_v36 = vadd.f32 1.0, %v3532_v60  ;;  %3553 = vpow2.f32 %v2760_v23  ;;  %v2992_v29 = vpop.f32.mrb[36].mxu1 }
 0x233   : > { %v3536_v11 = vpop.eup %3535  ;;  %v2304_v17 = vadd.f32 %v2303_v2, %v2240_v61  ;;  %v2057_v44 = vadd.f32 1.0, %v3534_v32  ;;  %v4531_v46 = vadd.f32 %v2992_v29, %v4326_v62  ;;  %v1726_v30 = vpop.f32.mrb[37].mxu1 }
 0x234   : > { %v3538_v42 = vpop.eup %3537  ;;  %3555 = vrcp.f32 %v2059_v36  ;;  %v2060_v58 = vadd.f32 1.0, %v3536_v11  ;;  %v4534_v54 = vadd.f32 %v4326_v62, %v1726_v30  ;;  %v2993_v35 = vpop.f32.mrb[38].mxu1 }
 0x235   : > { %v3540_v14 = vpop.eup %3539  ;;  %v2305_v6 = vadd.f32 %v2304_v17, %v2241_v63  ;;  %3557 = vrcp.f32 %v2057_v44  ;;  %v2058_v59 = vadd.f32 1.0, %v3538_v42  ;;  %v2765_v9 = vmul.f32 -1.442695, %v4531_v46  ;;  %v1729_v38 = vpop.f32.mrb[39].mxu1 }
 0x236   : > { %v3542_v45 = vpop.eup %3541  ;;  %3559 = vrcp.f32 %v2060_v58  ;;  %v2763_v27 = vmul.f32 -1.442695, %v4534_v54  ;;  %v4539_v18 = vadd.f32 %v2993_v35, %v4326_v62  ;;  %v4543_v55 = vadd.f32 %v4326_v62, %v1729_v38 }
 0x237   : > { %v3544_v1 = vpop.eup %3543  ;;  %v2306_v57 = vadd.f32 %v2305_v6, %v2242_v0  ;;  %3561 = vrcp.f32 %v2058_v59  ;;  %v2245_v10 = vmul.f32 %v3542_v45, %v4467_v13  ;;  %v2247_v36 = vmul.f32 %v3540_v14, %v4463_v3 }
 0x238   : > { %v3546_v24 = vpop.eup %3545  ;;  %3563 = vpow2.f32 %v2765_v9  ;;  %v2766_v39 = vmul.f32 -1.442695, %v4539_v18  ;;  %v2764_v28 = vmul.f32 -1.442695, %v4543_v55  ;;  %v2248_v30 = vmul.f32 %v3544_v1, %v4478_v22 }
 0x239   : > { %v3548_v20 = vpop.eup %3547  ;;  %v2307_v51 = vadd.f32 %v2306_v57, %v2243_v33  ;;  %3565 = vpow2.f32 %v2763_v27  ;;  %v2246_v4 = vmul.f32 %v3546_v24, %v4483_v48 }
 0x23a   : > { %v3550_v31 = vpop.eup %3549  ;;  %v2063_v37 = vadd.f32 1.0, %v3548_v20  ;;  %3567 = vpow2.f32 %v2766_v39  ;;  %v2996_v16 = vpop.f32.mrb[40].mxu1 }
 0x23b   : > { %v3552_v41 = vpop.eup %3551  ;;  %v2308_v26 = vadd.f32 %v2307_v51, %v2244_v8  ;;  %v2061_v40 = vadd.f32 1.0, %v3550_v31  ;;  %3569 = vpow2.f32 %v2764_v28  ;;  %v4551_v12 = vadd.f32 %v2996_v16, %v4326_v62  ;;  %v1742_v19 = vpop.f32.mrb[41].mxu1 }
 0x23c   : > { %v3554_v34 = vpop.eup %3553  ;;  %3571 = vrcp.f32 %v2063_v37  ;;  %v2064_v13 = vadd.f32 1.0, %v3552_v41  ;;  %v4554_v47 = vadd.f32 %v4326_v62, %v1742_v19  ;;  %v2997_v53 = vpop.f32.mrb[42].mxu1 }
 0x23d   : > { %v2309_v21 = vadd.f32 %v2308_v26, %v2245_v10  ;;  %3573 = vrcp.f32 %v2061_v40  ;;  %v2062_v48 = vadd.f32 1.0, %v3554_v34  ;;  %v2769_v56 = vmul.f32 -1.442695, %v4551_v12  ;;  %v1745_v23 = vpop.f32.mrb[43].mxu1 }
 0x23e   : > { %v3556_v60 = vpop.eup %3555  ;;  %3575 = vrcp.f32 %v2064_v13  ;;  %v2767_v61 = vmul.f32 -1.442695, %v4554_v47  ;;  %v4559_v2 = vadd.f32 %v2997_v53, %v4326_v62  ;;  %v4562_v63 = vadd.f32 %v4326_v62, %v1745_v23 }
 0x23f   : > { %v3558_v32 = vpop.eup %3557  ;;  %v2310_v29 = vadd.f32 %v2309_v21, %v2246_v4  ;;  %3577 = vrcp.f32 %v2062_v48  ;;  %v2251_v28 = vmul.f32 %v3556_v60, %v4493_v7 }
 0x240   : > { %v3560_v11 = vpop.eup %3559  ;;  %3579 = vpow2.f32 %v2769_v56  ;;  %v2770_v17 = vmul.f32 -1.442695, %v4559_v2  ;;  %v2768_v0 = vmul.f32 -1.442695, %v4562_v63  ;;  %v2249_v58 = vmul.f32 %v3558_v32, %v4496_v49 }
 0x241   : > { %v3562_v44 = vpop.eup %3561  ;;  %v2311_v42 = vadd.f32 %v2310_v29, %v2247_v36  ;;  %3581 = vpow2.f32 %v2767_v61  ;;  %v2252_v40 = vmul.f32 %v3560_v11, %v4500_v25 }
 0x242   : > { %v3564_v35 = vpop.eup %3563  ;;  %3583 = vpow2.f32 %v2770_v17  ;;  %v2250_v3 = vmul.f32 %v3562_v44, %v4506_v43 }
 0x243   : > { %v3566_v6 = vpop.eup %3565  ;;  %v2312_v59 = vadd.f32 %v2311_v42, %v2248_v30  ;;  %v2067_v14 = vadd.f32 1.0, %v3564_v35  ;;  %3585 = vpow2.f32 %v2768_v0  ;;  %v3000_v9 = vpop.f32.mrb[44].mxu1 }
 0x244   : > { %v3568_v38 = vpop.eup %3567  ;;  %v2065_v45 = vadd.f32 1.0, %v3566_v6  ;;  %v4571_v27 = vadd.f32 %v3000_v9, %v4326_v62  ;;  %v1758_v33 = vpop.f32.mrb[45].mxu1 }
 0x245   : > { %v3570_v22 = vpop.eup %3569  ;;  %v2313_v1 = vadd.f32 %v2312_v59, %v2249_v58  ;;  %3587 = vrcp.f32 %v2067_v14  ;;  %v2068_v49 = vadd.f32 1.0, %v3568_v38  ;;  %v4574_v57 = vadd.f32 %v4326_v62, %v1758_v33  ;;  %v3001_v24 = vpop.f32.mrb[46].mxu1 }
 0x246   : > { %v3572_v8 = vpop.eup %3571  ;;  %3589 = vrcp.f32 %v2065_v45  ;;  %v2066_v43 = vadd.f32 1.0, %v3570_v22  ;;  %v2773_v39 = vmul.f32 -1.442695, %v4571_v27  ;;  %v4578_v20 = vadd.f32 %v3001_v24, %v4326_v62  ;;  %v1761_v51 = vpop.f32.mrb[47].mxu1 }
 0x247   : > { %v3574_v10 = vpop.eup %3573  ;;  %v2314_v31 = vadd.f32 %v2313_v1, %v2250_v3  ;;  %3591 = vrcp.f32 %v2068_v49  ;;  %v2771_v4 = vmul.f32 -1.442695, %v4574_v57  ;;  %v4584_v41 = vadd.f32 %v4326_v62, %v1761_v51 }
 0x248   : > { %v3576_v37 = vpop.eup %3575  ;;  %3593 = vrcp.f32 %v2066_v43  ;;  %v2774_v16 = vmul.f32 -1.442695, %v4578_v20  ;;  %v2253_v13 = vmul.f32 %v3574_v10, %v4513_v52  ;;  %v2255_v56 = vmul.f32 %v3572_v8, %v4510_v5 }
 0x249   : > { %v3578_v26 = vpop.eup %3577  ;;  %v2315_v19 = vadd.f32 %v2314_v31, %v2251_v28  ;;  %3595 = vpow2.f32 %v2773_v39  ;;  %v2772_v53 = vmul.f32 -1.442695, %v4584_v41  ;;  %v2256_v29 = vmul.f32 %v3576_v37, %v4518_v15 }
 0x24a   : > { %v3580_v34 = vpop.eup %3579  ;;  %v2254_v7 = vmul.f32 %v3578_v26, %v4522_v50  ;;  %3597 = vpow2.f32 %v2771_v4 }
 0x24b   : > { %v3582_v21 = vpop.eup %3581  ;;  %v4590_v48 = vadd.f32 %v2315_v19, %v2252_v40  ;;  %v2071_v23 = vadd.f32 1.0, %v3580_v34  ;;  %3599 = vpow2.f32 %v2774_v16  ;;  %v3004_v60 = vpop.f32.mrb[48].mxu1 }
 0x24c   : > { %v3584_v61 = vpop.eup %3583  ;;  %v2323_v25 = vadd.f32 %v2254_v7, %v2253_v13  ;;  %v2069_v32 = vadd.f32 1.0, %v3582_v21  ;;  %3601 = vpow2.f32 %v2772_v53  ;;  %v4594_v36 = vadd.f32 %v3004_v60, %v4326_v62  ;;  %v1774_v52 = vpop.f32.mrb[49].mxu1 }
 0x24d   : > { %v3586_v50 = vpop.eup %3585  ;;  %3603 = vrcp.f32 %v2071_v23  ;;  %v2072_v11 = vadd.f32 1.0, %v3584_v61  ;;  %v4598_v17 = vadd.f32 %v4326_v62, %v1774_v52  ;;  %v3005_v5 = vpop.f32.mrb[50].mxu1 }
 0x24e   : > { %v2324_v0 = vadd.f32 %v2323_v25, %v2255_v56  ;;  %3605 = vrcp.f32 %v2069_v32  ;;  %v2070_v44 = vadd.f32 1.0, %v3586_v50  ;;  %v2777_v30 = vmul.f32 -1.442695, %v4594_v36  ;;  %v1777_v42 = vpop.f32.mrb[51].mxu1 }
 0x24f   : > { %v3588_v58 = vpop.eup %3587  ;;  %3607 = vrcp.f32 %v2072_v11  ;;  %v2775_v35 = vmul.f32 -1.442695, %v4598_v17  ;;  %v4603_v6 = vadd.f32 %v3005_v5, %v4326_v62  ;;  %v4606_v3 = vadd.f32 %v4326_v62, %v1777_v42 }
 0x250   : > { %v3590_v15 = vpop.eup %3589  ;;  %v2325_v59 = vadd.f32 %v2324_v0, %v2256_v29  ;;  %3609 = vrcp.f32 %v2070_v44  ;;  %v2259_v10 = vmul.f32 %v3588_v58, %v4531_v46 }
 0x251   : > { %v3592_v14 = vpop.eup %3591  ;;  %v2257_v9 = vmul.f32 %v3590_v15, %v4534_v54  ;;  %3611 = vpow2.f32 %v2777_v30  ;;  %v2778_v38 = vmul.f32 -1.442695, %v4603_v6  ;;  %v2776_v33 = vmul.f32 -1.442695, %v4606_v3 }
 0x252   : > { %v3594_v45 = vpop.eup %3593  ;;  %3613 = vpow2.f32 %v2775_v35  ;;  %v2260_v13 = vmul.f32 %v3592_v14, %v4539_v18 }
 0x253   : > { %v3596_v22 = vpop.eup %3595  ;;  %v2326_v1 = vadd.f32 %v2325_v59, %v2257_v9  ;;  %v2258_v49 = vmul.f32 %v3594_v45, %v4543_v55  ;;  %3615 = vpow2.f32 %v2778_v38  ;;  %v3008_v24 = vpop.f32.mrb[52].mxu1 }
 0x254   : > { %v3598_v8 = vpop.eup %3597  ;;  %v2075_v43 = vadd.f32 1.0, %v3596_v22  ;;  %3617 = vpow2.f32 %v2776_v33  ;;  %v4613_v39 = vadd.f32 %v3008_v24, %v4326_v62  ;;  %v1790_v54 = vpop.f32.mrb[53].mxu1 }
 0x255   : > { %v3600_v51 = vpop.eup %3599  ;;  %v2327_v28 = vadd.f32 %v2326_v1, %v2258_v49  ;;  %v2073_v31 = vadd.f32 1.0, %v3598_v8  ;;  %v4617_v4 = vadd.f32 %v4326_v62, %v1790_v54  ;;  %v3009_v37 = vpop.f32.mrb[54].mxu1 }
 0x256   : > { %v3602_v16 = vpop.eup %3601  ;;  %3619 = vrcp.f32 %v2075_v43  ;;  %v2076_v55 = vadd.f32 1.0, %v3600_v51  ;;  %v2781_v26 = vmul.f32 -1.442695, %v4613_v39  ;;  %v4621_v40 = vadd.f32 %v3009_v37, %v4326_v62  ;;  %v1793_v19 = vpop.f32.mrb[55].mxu1  ;;  %v4630_v62 = vld [vmem:[%s4752_s4] ss:$0 sm:$0xff] }
 0x257   : > { %v3604_v34 = vpop.eup %3603  ;;  %v2328_v7 = vadd.f32 %v2327_v28, %v2259_v10  ;;  %3621 = vrcp.f32 %v2073_v31  ;;  %v2074_v46 = vadd.f32 1.0, %v3602_v16  ;;  %v2779_v21 = vmul.f32 -1.442695, %v4617_v4 }
 0x258   : > { %v3606_v53 = vpop.eup %3605  ;;  %3623 = vrcp.f32 %v2076_v55  ;;  %v2782_v56 = vmul.f32 -1.442695, %v4621_v40  ;;  %v4633_v18 = vadd.f32 %v4630_v62, %v1793_v19  ;;  %v2263_v11 = vmul.f32 %v3604_v34, %v4551_v12 }
 0x259   : > { %v3608_v23 = vpop.eup %3607  ;;  %v2261_v60 = vmul.f32 %v3606_v53, %v4554_v47  ;;  %v2329_v61 = vadd.f32 %v2328_v7, %v2260_v13  ;;  %3625 = vrcp.f32 %v2074_v46 }
 0x25a   : > { %v3610_v25 = vpop.eup %3609  ;;  %3627 = vpow2.f32 %v2781_v26  ;;  %v2780_v29 = vmul.f32 -1.442695, %v4633_v18 }
 0x25b   : > { %v3612_v32 = vpop.eup %3611  ;;  %v2330_v52 = vadd.f32 %v2329_v61, %v2261_v60  ;;  %v2262_v50 = vmul.f32 %v3610_v25, %v4562_v63  ;;  %3629 = vpow2.f32 %v2779_v21  ;;  %v2264_v63 = vmul.f32 %v3608_v23, %v4559_v2 }
 0x25c   : > { %v3614_v47 = vpop.eup %3613  ;;  %v2079_v5 = vadd.f32 1.0, %v3612_v32  ;;  %3631 = vpow2.f32 %v2782_v56  ;;  %v3012_v0 = vpop.f32.mrb[56].mxu1 }
 0x25d   : > { %v3616_v44 = vpop.eup %3615  ;;  %v2331_v30 = vadd.f32 %v2330_v52, %v2262_v50  ;;  %v2077_v42 = vadd.f32 1.0, %v3614_v47  ;;  %3633 = vpow2.f32 %v2780_v29  ;;  %v4639_v58 = vadd.f32 %v4630_v62, %v3012_v0  ;;  %v1806_v35 = vpop.f32.mrb[57].mxu1 }
 0x25e   : > { %v3618_v15 = vpop.eup %3617  ;;  %3635 = vrcp.f32 %v2079_v5  ;;  %v2080_v59 = vadd.f32 1.0, %v3616_v44  ;;  %v4643_v14 = vadd.f32 %v4630_v62, %v1806_v35  ;;  %v3013_v12 = vpop.f32.mrb[58].mxu1 }
 0x25f   : > { %v2332_v9 = vadd.f32 %v2331_v30, %v2263_v11  ;;  %3637 = vrcp.f32 %v2077_v42  ;;  %v2078_v38 = vadd.f32 1.0, %v3618_v15  ;;  %v2785_v45 = vmul.f32 -1.442695, %v4639_v58  ;;  %v1809_v33 = vpop.f32.mrb[59].mxu1 }
 0x260   : > { %v3620_v22 = vpop.eup %3619  ;;  %3639 = vrcp.f32 %v2080_v59  ;;  %v2783_v1 = vmul.f32 -1.442695, %v4643_v14  ;;  %v4648_v49 = vadd.f32 %v4630_v62, %v3013_v12  ;;  %v4651_v2 = vadd.f32 %v4630_v62, %v1809_v33 }
 0x261   : > { %v3622_v24 = vpop.eup %3621  ;;  %v2333_v8 = vadd.f32 %v2332_v9, %v2264_v63  ;;  %3641 = vrcp.f32 %v2078_v38  ;;  %v2267_v19 = vmul.f32 %v3620_v22, %v4571_v27 }
 0x262   : > { %v3624_v43 = vpop.eup %3623  ;;  %v2265_v54 = vmul.f32 %v3622_v24, %v4574_v57  ;;  %3643 = vpow2.f32 %v2785_v45  ;;  %v2786_v51 = vmul.f32 -1.442695, %v4648_v49  ;;  %v2784_v10 = vmul.f32 -1.442695, %v4651_v2 }
 0x263   : > { %v3626_v28 = vpop.eup %3625  ;;  %3645 = vpow2.f32 %v2783_v1  ;;  %v2268_v46 = vmul.f32 %v3624_v43, %v4578_v20 }
 0x264   : > { %v3628_v31 = vpop.eup %3627  ;;  %v2334_v37 = vadd.f32 %v2333_v8, %v2265_v54  ;;  %v2266_v16 = vmul.f32 %v3626_v28, %v4584_v41  ;;  %3647 = vpow2.f32 %v2786_v51  ;;  %v3016_v55 = vpop.f32.mrb[60].mxu1 }
 0x265   : > { %v3630_v26 = vpop.eup %3629  ;;  %v2083_v34 = vadd.f32 1.0, %v3628_v31  ;;  %3649 = vpow2.f32 %v2784_v10  ;;  %v4659_v57 = vadd.f32 %v4630_v62, %v3016_v55  ;;  %v1822_v13 = vpop.f32.mrb[61].mxu1 }
 0x266   : > { %v3632_v7 = vpop.eup %3631  ;;  %v2335_v53 = vadd.f32 %v2334_v37, %v2266_v16  ;;  %v2081_v21 = vadd.f32 1.0, %v3630_v26  ;;  %v4663_v56 = vadd.f32 %v4630_v62, %v1822_v13  ;;  %v3017_v41 = vpop.f32.mrb[62].mxu1 }
 0x267   : > { %v3634_v23 = vpop.eup %3633  ;;  %3651 = vrcp.f32 %v2083_v34  ;;  %v2084_v60 = vadd.f32 1.0, %v3632_v7  ;;  %v2789_v27 = vmul.f32 -1.442695, %v4659_v57  ;;  %v4667_v61 = vadd.f32 %v4630_v62, %v3017_v41  ;;  %v1825_v25 = vpop.f32.mrb[63].mxu1 }
 0x268   : > { %v3636_v32 = vpop.eup %3635  ;;  %v2336_v52 = vadd.f32 %v2335_v53, %v2267_v19  ;;  %3653 = vrcp.f32 %v2081_v21  ;;  %v2082_v50 = vadd.f32 1.0, %v3634_v23  ;;  %v2787_v20 = vmul.f32 -1.442695, %v4663_v56 }
 0x269   : > { %v3638_v29 = vpop.eup %3637  ;;  %3655 = vrcp.f32 %v2084_v60  ;;  %v2790_v47 = vmul.f32 -1.442695, %v4667_v61  ;;  %v4672_v11 = vadd.f32 %v4630_v62, %v1825_v25  ;;  %v2271_v62 = vmul.f32 %v3636_v32, %v4594_v36 }
 0x26a   : > { %v3640_v5 = vpop.eup %3639  ;;  %v2269_v0 = vmul.f32 %v3638_v29, %v4598_v17  ;;  %v2337_v44 = vadd.f32 %v2336_v52, %v2268_v46  ;;  %3657 = vrcp.f32 %v2082_v50 }
 0x26b   : > { %v3642_v30 = vpop.eup %3641  ;;  %3659 = vpow2.f32 %v2789_v27  ;;  %v2788_v42 = vmul.f32 -1.442695, %v4672_v11  ;;  %v2272_v33 = vmul.f32 %v3640_v5, %v4603_v6 }
 0x26c   : > { %v3644_v35 = vpop.eup %3643  ;;  %v2338_v15 = vadd.f32 %v2337_v44, %v2269_v0  ;;  %v2270_v63 = vmul.f32 %v3642_v30, %v4606_v3  ;;  %3661 = vpow2.f32 %v2787_v20 }
 0x26d   : > { %v3646_v59 = vpop.eup %3645  ;;  %v2087_v12 = vadd.f32 1.0, %v3644_v35  ;;  %3663 = vpow2.f32 %v2790_v47  ;;  %v2317_v47 = vrot.slane %v4590_v48, 4 }
 0x26e   : > { %v3648_v9 = vpop.eup %3647  ;;  %v2339_v38 = vadd.f32 %v2338_v15, %v2270_v63  ;;  %v2085_v45 = vadd.f32 1.0, %v3646_v59  ;;  %3665 = vpow2.f32 %v2788_v42 }
 0x26f   : > { %v3650_v17 = vpop.eup %3649  ;;  %v2088_v1 = vadd.f32 1.0, %v3648_v9  ;;  %v2318_v30 = vadd.f32 %v2317_v47, %v4590_v48 }
 0x270   : > { %v2340_v22 = vadd.f32 %v2339_v38, %v2271_v62  ;;  %3667 = vrcp.f32 %v2085_v45  ;;  %v2086_v24 = vadd.f32 1.0, %v3650_v17  ;;  %v2285_v17 = vld [vmem:[#allocation2] sm:$0x3] }
 0x271   : > { %v3652_v8 = vpop.eup %3651  ;;  %3669 = vrcp.f32 %v2087_v12  ;;  %v2319_v15 = vrot.slane %v2318_v30, 2 }
 0x272   : > { %v3654_v3 = vpop.eup %3653  ;;  %v2341_v43 = vadd.f32 %v2340_v22, %v2272_v33  ;;  %3671 = vrcp.f32 %v2086_v24  ;;  %v2275_v55 = vmul.f32 %v3652_v8, %v4613_v39  ;;  %v2791_v22 = vld [vmem:[%s4754_s6] ss:$0 sm:$0xff] }
 0x273   : > { %v3656_v54 = vpop.eup %3655  ;;  %v2273_v51 = vmul.f32 %v3654_v3, %v4617_v4  ;;  %3673 = vrcp.f32 %v2088_v1  ;;  %v2320_v12 = vadd.f32 %v2319_v15, %v2318_v30 }
 0x274   : > { %v3658_v10 = vpop.eup %3657  ;;  %v2276_v13 = vmul.f32 %v3656_v54, %v4621_v40 }
 0x275   : > { %v3660_v36 = vpop.eup %3659  ;;  %v2342_v28 = vadd.f32 %v2341_v43, %v2273_v51  ;;  %v2274_v31 = vmul.f32 %v3658_v10, %v4633_v18  ;;  %v2321_v62 = vrot.slane %v2320_v12, 1 }
 0x276   : > { %v3662_v37 = vpop.eup %3661  ;;  %v2091_v6 = vadd.f32 1.0, %v3660_v36 }
 0x277   : > { %v3664_v16 = vpop.eup %3663  ;;  %v2343_v26 = vadd.f32 %v2342_v28, %v2274_v31  ;;  %v2089_v19 = vadd.f32 1.0, %v3662_v37  ;;  %v2322_v45 = vadd.f32 %v2321_v62, %v2320_v12 }
 0x278   : > { %v3666_v34 = vpop.eup %3665  ;;  %v2092_v46 = vadd.f32 1.0, %v3664_v16 }
 0x279   : > { %v2344_v7 = vadd.f32 %v2343_v26, %v2275_v55  ;;  %3675 = vrcp.f32 %v2089_v19  ;;  %v2090_v4 = vadd.f32 1.0, %v3666_v34 }
 0x27a   : > { %v3668_v53 = vpop.eup %3667  ;;  %3677 = vrcp.f32 %v2091_v6 }
 0x27b   : > { %v3670_v21 = vpop.eup %3669  ;;  %v2277_v41 = vmul.f32 %v3668_v53, %v4643_v14  ;;  %v2345_v18 = vadd.f32 %v2344_v7, %v2276_v13  ;;  %3679 = vrcp.f32 %v2090_v4 }
 0x27c   : > { %v3672_v23 = vpop.eup %3671  ;;  %3681 = vrcp.f32 %v2092_v46  ;;  %v2279_v25 = vmul.f32 %v3670_v21, %v4639_v58 }
 0x27d   : > { %v2346_v60 = vadd.f32 %v2345_v18, %v2277_v41  ;;  %v2278_v39 = vmul.f32 %v3672_v23, %v4651_v2  ;;  %v3674_v27 = vpop.eup %3673 }
 0x27e   : > { %v2280_v32 = vmul.f32 %v3674_v27, %v4648_v49 }
 0x27f   : > { %v2347_v40 = vadd.f32 %v2346_v60, %v2278_v39 }
 0x281   : > { %v2348_v52 = vadd.f32 %v2347_v40, %v2279_v25 }
 0x283   : > { %v3676_v50 = vpop.eup %3675  ;;  %v2349_v20 = vadd.f32 %v2348_v52, %v2280_v32 }
 0x284   : > { %v3678_v29 = vpop.eup %3677  ;;  %v2281_v14 = vmul.f32 %v3676_v50, %v4663_v56 }
 0x285   : > { %v3680_v5 = vpop.eup %3679  ;;  %v2283_v58 = vmul.f32 %v3678_v29, %v4659_v57 }
 0x286   : > { %v2350_v0 = vadd.f32 %v2349_v20, %v2281_v14  ;;  %v2282_v44 = vmul.f32 %v3680_v5, %v4672_v11  ;;  %v3682_v2 = vpop.eup %3681 }
 0x287   : > { %v2284_v49 = vmul.f32 %v3682_v2, %v4667_v61 }
 0x288   : > { %v2351_v42 = vadd.f32 %v2350_v0, %v2282_v44 }
 0x28a   : > { %v2352_v35 = vadd.f32 %v2351_v42, %v2283_v58 }
 0x28c   : > { %v2353_v63 = vadd.f32 %v2352_v35, %v2284_v49 }
 0x28e   : > { %v2354_v59 = vrot.slane %v2353_v63, 4 }
 0x290   : > { %v2355_v9 = vadd.f32 %v2354_v59, %v2353_v63 }
 0x292   : > { %v2356_v56 = vrot.slane %v2355_v9, 2 }
 0x294   : > { %v2357_v38 = vadd.f32 %v2356_v56, %v2355_v9 }
 0x296   : > { %v2358_v11 = vrot.slane %v2357_v38, 1 }
 0x298   : > { %v2359_v48 = vadd.f32 %v2358_v11, %v2357_v38 }
 0x29a   : > { %v2363_v57 = vsel %vm2362_vm2, %v2359_v48, %v2322_v45 }
 0x29b   : > { %v2365_v33 = vadd.f32 %v2363_v57, %v2285_v17 }
 0x29d   : > { %2366 = vst [vmem:[#allocation2] sm:$0x3] %v2365_v33 }
 0x2a4   : > { %v2370_v61 = vld [vmem:[#allocation2] sm:$0x3] }
 0x2a5   : > { %3051 = vmatmul.mubr.f32.vlgmr.msra.gmra.mrb[64].mxu0 %v2370_v61 }
 0x378   : > { %v2460_v1 = vpop.f32.mrb[64].mxu0 }
 0x379   : > { %v2461_v24 = vadd.f32 %v2791_v22, %v2460_v1  ;;  %v3052_v8 = vpop.f32.mrb[65].mxu0 }
 0x37b   : > { %2464 = vst [vmem:[%s297_s21] sm:$0x3] %v2461_v24 }
 0x37c   : > { %3698 = shalt.err (!%p3695_p5)
}
 0x37d   : > { %s3699_s16 = scalar_lea.hbm %s4701_s8, 32  ;;  %s3703_s20 = scalar_lea.hbm %s4755_s7, 64 }
 0x37e   : > { %p3700_p6 = scmp.ne.s32.totalorder %s4701_s8, %s3699_s16  ;;  %p3704_p10 = scmp.lt.u32.totalorder %s4701_s8, %s4755_s7 }
 0x37f   : > { %p3705_p11 = scmp.lt.u32.totalorder %s3703_s20, %s3699_s16  ;;  %p3707_p13 = scmp.lt.u32.totalorder %s3699_s16, %s4701_s8 }
 0x380   : > { %p3701_p7 = pnand %p3700_p6, %p3849_p4 }
 0x381   : > { %p3706_p12 = por %p3705_p11, %p3704_p10 }
 0x382   : > { %p3702_p9 = pneg %p3701_p7 }
 0x383   : > { %p3708_p0 = por %p3707_p13, %p3706_p12 }
 0x385   : > { %p3709_p1 = pnand %p3708_p0, %p3702_p9 }
 0x387   : > { %3712 = shalt.err (!%p3709_p1)
}
 0x388   : > { %3077 = dma.vmem_to_hbm [thread:$0]  (%p3849_p4), %s4703_s22, 32, %s4701_s8, %s2466_s10  }
 0x389 PF: > { %p3083_p2 = scmp.ge.s32.totalorder %s3763_s29, 2  ;;  %s2491_s30 = sand.u32 1, %s3743_s24  }
 0x38a   : > { %s2492_s12 = scalar_lea.sflag [#allocation4], %s2491_s30 }
 0x38b   : > { %p3080_p3 = pnand %p3083_p2, %p3856_p8 }
 0x38d   : > { %3738 = dma.done.wait (!%p3080_p3), %s2492_s12, 32  }
 0x38e   : > { %3740 = vsyncadd (!%p3080_p3), %s2492_s12, 4294967264  ;;  %s20_s29 = sadd.s32 1, %s3763_s29   ;;  %s4758_s24 = smov %s3747_s25 }
 0x38f   : > { %p17_p5 = scmp.ge.s32.totalorder %s20_s29, 4   ;;  %s4759_s25 = smov %s3751_s26 }
 0x390   : > { %s4760_s26 = smov %s3862_s14  ;;  %s4761_s27 = smov %s3759_s28 }
 0x391   : > { %s4762_s28 = smov %s4764_s9  ;;  %19 = sbr.rel (!%p17_p5) target bundleno = 4 (0x4), region = 91 }
 0x398   :  { %2497 = vsyncpa [#allocation4], 1 }
 0x399   :  { %2499 = vsyncpa [#allocation4 + $0x1], 1 }

</bundles_post_ra>
